<compile_context>
chip_gen: v7x
topology: tpu7x:2x2x1
jax: 0.10.0
libtpu: 0.0.40
codegen_flags: <defaults>
</compile_context>

<pallas_src>
import jax
import jax.numpy as jnp
from jax.experimental import pallas as pl
from jax.experimental.pallas import tpu as pltpu

KSIZE = 7
PAD = (KSIZE - 1) // 2        # 3
LANE = 128
CHUNK = 512                   # lane-chunk of the flat H*W axis
SUBL = 8                      # sublane rows per pooling / gating block


def _round_up(a, b):
    return (a + b - 1) // b * b


def _make_kernel(C, H, W):
    HW = H * W
    BASE = PAD * W + PAD                    # max |flat tap offset|
    PADL = _round_up(BASE, LANE)            # aligned left zero-pad of the scratch
    L = PADL + HW + BASE                    # flat padded scratch length
    chunks = [(cs, min(CHUNK, HW - cs)) for cs in range(0, HW, CHUNK)]
    inv_c = 1.0 / C

    def kernel(x_ref, col_ref, w_ref, b_ref, o_ref, pad_ref):
        # ---- 1. zero only the two pad strips (interior is fully overwritten
        #         below; re-done every step -- safe under megacore) ----------
        pad_ref[:, pl.ds(0, PADL)] = jnp.zeros((2, PADL), jnp.float32)
        pad_ref[:, pl.ds(PADL + HW, BASE)] = jnp.zeros((2, BASE), jnp.float32)

        # ---- 2. fused channel max+mean pooling, chunked over HW ------------
        for cs, ch in chunks:
            if C <= SUBL:
                blk = x_ref[0, pl.ds(0, C), pl.ds(cs, ch)].astype(jnp.float32)
                mx = jnp.max(blk, axis=0, keepdims=True)
                sm = jnp.sum(blk, axis=0, keepdims=True)
            else:
                nfull = C // SUBL
                rm = x_ref[0, pl.ds(0, SUBL), pl.ds(cs, ch)].astype(jnp.float32)
                rs = rm
                for b in range(1, nfull):
                    blk = x_ref[0, pl.ds(b * SUBL, SUBL),
                                pl.ds(cs, ch)].astype(jnp.float32)
                    rm = jnp.maximum(rm, blk)
                    rs = rs + blk
                mx = jnp.max(rm, axis=0, keepdims=True)
                sm = jnp.sum(rs, axis=0, keepdims=True)
                rem = C - nfull * SUBL
                if rem:
                    blk = x_ref[0, pl.ds(nfull * SUBL, rem),
                                pl.ds(cs, ch)].astype(jnp.float32)
                    mx = jnp.maximum(mx, jnp.max(blk, axis=0, keepdims=True))
                    sm = sm + jnp.sum(blk, axis=0, keepdims=True)
            mn = sm * inv_c
            pad_ref[pl.ds(0, 1), pl.ds(PADL + cs, ch)] = mx
            pad_ref[pl.ds(1, 1), pl.ds(PADL + cs, ch)] = mn

        # ---- 3. 7x7 conv (SAME pad) + sigmoid + gating, chunked over HW ----
        bias = b_ref[0]
        for cs, ch in chunks:
            colv = col_ref[:, pl.ds(cs, ch)]            # (1, ch) int32 col ids
            acc_mx = jnp.zeros((2, ch), jnp.float32)    # weighted by max-chan w
            acc_mn = jnp.zeros((2, ch), jnp.float32)    # weighted by mean-chan w
            for dj in range(KSIZE):
                s_mx = None
                s_mn = None
                for di in range(KSIZE):
                    off = PADL - BASE + di * W + dj + cs        # static offset
                    tap = pad_ref[:, pl.ds(off, ch)]            # (2, ch)
                    w0 = w_ref[di * KSIZE + dj]                 # max-channel w
                    w1 = w_ref[KSIZE * KSIZE + di * KSIZE + dj] # mean-channel w
                    t0 = w0 * tap
                    t1 = w1 * tap
                    s_mx = t0 if s_mx is None else s_mx + t0
                    s_mn = t1 if s_mn is None else s_mn + t1
                # horizontal SAME-padding validity: exactly one compare per
                # off-centre kernel column (other bound is vacuous).
                if dj < PAD:
                    cond = colv >= (PAD - dj)
                elif dj > PAD:
                    cond = colv < (W + PAD - dj)
                else:
                    cond = None
                if cond is not None:
                    s_mx = jnp.where(cond, s_mx, 0.0)
                    s_mn = jnp.where(cond, s_mn, 0.0)
                acc_mx = acc_mx + s_mx
                acc_mn = acc_mn + s_mn

            # combine the two sublane rows: row 0 of acc_mx (max channel) and
            # row 1 of acc_mn (mean channel).
            conv = acc_mx[0:1, :] + acc_mn[1:2, :] + bias       # (1, ch)
            scale = jax.nn.sigmoid(conv)

            for c0 in range(0, C, SUBL):
                r = min(SUBL, C - c0)
                xb = x_ref[0, pl.ds(c0, r), pl.ds(cs, ch)].astype(jnp.float32)
                o_ref[0, pl.ds(c0, r), pl.ds(cs, ch)] = \
                    (xb * scale).astype(o_ref.dtype)

    return kernel, L


def spatial_gate(x, w_folded_flat, bias_folded):
    """x: (N, C, H, W); w_folded_flat: (2*7*7,) [channel, ki, kj] with the
    BN scale folded in (channel 0 = max, channel 1 = mean); bias_folded: (1,)."""
    N, C, H, W = x.shape
    HW = H * W
    x2 = x.reshape(N, C, HW)                 # lane-dense I/O layout (free)
    col_ids = (jnp.arange(HW, dtype=jnp.int32) % W).reshape(1, HW)

    kernel, L = _make_kernel(C, H, W)

    # VMEM budget: double-buffered in/out slabs + col ids + flat padded scratch,
    # capped below the per-TensorCore physical capacity (64 MiB on v7x).
    itemsize = jnp.dtype(x.dtype).itemsize
    slab = C * HW * itemsize
    needed = (4 * slab               # input + output, double-buffered
              + 2 * HW * 4           # col ids (double-buffered)
              + 2 * L * 4            # pad scratch
              + (4 << 20))           # headroom
    try:
        cap = int(pltpu.get_tpu_info().vmem_capacity_bytes)
    except Exception:
        cap = 64 * 1024 * 1024       # conservative (v7x per-TC) fallback
    vmem_limit = int(min(cap - (8 << 20), max(needed, 32 << 20)))
    if needed > cap - (8 << 20):
        # TODO(synk): H-band tiling with a +/-3-row halo (grid=(N, H_tiles),
        # dimension_semantics=("parallel","parallel")) so a full (C, HW) slab
        # never has to fit VMEM; required for very large C*H*W on v7x (64 MiB)
        # and it also feeds the megacore / DMA pipeline when N is 1-2.
        raise NotImplementedError(
            "C*H*W slab too large for on-chip VMEM on this TPU generation")

    out2 = pl.pallas_call(
        kernel,
        out_shape=jax.ShapeDtypeStruct((N, C, HW), x.dtype),
        grid_spec=pltpu.PrefetchScalarGridSpec(
            num_scalar_prefetch=0,
            grid=(N,),
            in_specs=[
                pl.BlockSpec((1, C, HW), lambda n: (n, 0, 0)),
                pl.BlockSpec((1, HW), lambda n: (0, 0)),
                pl.BlockSpec(memory_space=pltpu.MemorySpace.SMEM),
                pl.BlockSpec(memory_space=pltpu.MemorySpace.SMEM),
            ],
            out_specs=pl.BlockSpec((1, C, HW), lambda n: (n, 0, 0)),
            scratch_shapes=[pltpu.VMEM((2, L), jnp.float32)],
        ),
        compiler_params=pltpu.CompilerParams(
            dimension_semantics=("parallel",),
            vmem_limit_bytes=vmem_limit),
    )(x2, col_ids, w_folded_flat, bias_folded)
    return out2.reshape(N, C, H, W)


def spatial_gate_reference(x, conv_w, gamma, beta, run_mean, run_var):
    """Pure-JAX reference mirroring the PyTorch module (eval-mode BN)."""
    mx = jnp.max(x, axis=1, keepdims=True)
    mn = jnp.mean(x, axis=1, keepdims=True)
    comp = jnp.concatenate([mx, mn], axis=1)                  # (N, 2, H, W)
    y = jax.lax.conv_general_dilated(
        comp, conv_w, window_strides=(1, 1),
        padding=((PAD, PAD), (PAD, PAD)),
        dimension_numbers=("NCHW", "OIHW", "NCHW"))           # (N, 1, H, W)
    y = (y - run_mean) / jnp.sqrt(run_var + 1e-5) * gamma + beta
    return x * jax.nn.sigmoid(y)


def _fold_bn(conv_w, gamma, beta, run_mean, run_var):
    bn_scale = gamma / jnp.sqrt(run_var + 1e-5)               # (1,)
    w_folded_flat = (conv_w[0] * bn_scale[0]).reshape(-1)     # (2*7*7,)
    bias_folded = beta - run_mean * bn_scale                  # (1,)
    return w_folded_flat.astype(jnp.float32), bias_folded.astype(jnp.float32)


def _run_case(key, N, C, H, W):
    kx, kw, kg, kb = jax.random.split(key, 4)
    x = jax.random.normal(kx, (N, C, H, W), dtype=jnp.float32)

    conv_w = jax.random.normal(kw, (1, 2, KSIZE, KSIZE), jnp.float32) * 0.1
    gamma = 1.0 + 0.1 * jax.random.normal(kg, (1,), jnp.float32)   # BN weight
    beta = 0.1 * jax.random.normal(kb, (1,), jnp.float32)          # BN bias
    run_mean = jnp.zeros((1,), jnp.float32)                        # BN running
    run_var = jnp.ones((1,), jnp.float32)                          # stats (eval)

    w_flat, b_fold = _fold_bn(conv_w, gamma, beta, run_mean, run_var)

    out = spatial_gate(x, w_flat, b_fold)
    out = jax.block_until_ready(out)

    ref = spatial_gate_reference(x, conv_w, gamma, beta, run_mean, run_var)
    assert out.shape == x.shape
    assert jnp.allclose(out, ref, atol=2e-5, rtol=1e-5), (
        float(jnp.max(jnp.abs(out - ref))))


if __name__ == "__main__":
    key = jax.random.PRNGKey(0)
    k1, k2 = jax.random.split(key)

    # Primary small case matching the module (batch=2, channels=4, spatial=16).
    _run_case(k1, N=2, C=4, H=16, W=16)
    # Secondary case exercising C>8 (sublane blocks + remainder) and >1 chunk.
    _run_case(k2, N=1, C=20, H=24, W=40)

    print("KERNEL_OK")
</pallas_src>

<mosaic_0001>
module attributes {stable_mosaic.version = 11 : i64} {
  func.func @kernel(%arg0: i32, %arg1: memref<1x4x256xf32, #tpu.memory_space<vmem>>, %arg2: memref<1x256xi32, #tpu.memory_space<vmem>>, %arg3: memref<98xf32, #tpu.memory_space<smem>>, %arg4: memref<1xf32, #tpu.memory_space<smem>>, %arg5: memref<1x4x256xf32, #tpu.memory_space<vmem>>, %arg6: memref<2x435xf32, #tpu.memory_space<vmem>>) attributes {dimension_semantics = [#tpu.dimension_semantics<parallel>], iteration_bounds = array<i64: 2>, scalar_prefetch = 0 : i64, scratch_operands = 1 : i64, tpu.core_type = #tpu.core_type<tc>, window_params = [{transform_indices = @transform_0, window_bounds = array<i64: 1, 4, 256>}, {pipeline_mode = #tpu.pipeline_mode<synchronous>, transform_indices = @transform_1, window_bounds = array<i64: 1, 256>}, {transform_indices = @transform_2, window_bounds = array<i64: 98>}, {transform_indices = @transform_3, window_bounds = array<i64: 1>}, {transform_indices = @transform_4, window_bounds = array<i64: 1, 4, 256>}]} {
    %cst = arith.constant 0.000000e+00 : f32
    %0 = vector.broadcast %cst : f32 to vector<2x128xf32>
    %c0 = arith.constant 0 : index
    %c0_0 = arith.constant 0 : index
    %1 = vector.load %arg6[%c0, %c0_0] : memref<2x435xf32, #tpu.memory_space<vmem>>, vector<2x128xf32>
    tpu.vector_store %arg6[%c0, %c0_0], %0 {strides = array<i32>} : memref<2x435xf32, #tpu.memory_space<vmem>>, vector<2x128xf32>,
    %cst_1 = arith.constant 0.000000e+00 : f32
    %2 = vector.broadcast %cst_1 : f32 to vector<2x51xf32>
    %c0_2 = arith.constant 0 : index
    %c384 = arith.constant 384 : index
    %3 = vector.load %arg6[%c0_2, %c384] : memref<2x435xf32, #tpu.memory_space<vmem>>, vector<2x51xf32>
    tpu.vector_store %arg6[%c0_2, %c384], %2 {strides = array<i32>} : memref<2x435xf32, #tpu.memory_space<vmem>>, vector<2x51xf32>,
    %c0_3 = arith.constant 0 : index
    %c0_4 = arith.constant 0 : index
    %c0_5 = arith.constant 0 : index
    %4 = vector.load %arg1[%c0_3, %c0_4, %c0_5] : memref<1x4x256xf32, #tpu.memory_space<vmem>>, vector<1x4x256xf32>
    %5 = vector.shape_cast %4 : vector<1x4x256xf32> to vector<4x256xf32>
    %cst_6 = arith.constant dense<0xFF800000> : vector<256xf32>
    %6 = vector.multi_reduction <maximumf>, %5, %cst_6 [0] : vector<4x256xf32> to vector<256xf32>
    %7 = vector.shape_cast %6 : vector<256xf32> to vector<1x256xf32>
    %cst_7 = arith.constant dense<0.000000e+00> : vector<256xf32>
    %8 = vector.multi_reduction <add>, %5, %cst_7 [0] : vector<4x256xf32> to vector<256xf32>
    %9 = vector.shape_cast %8 : vector<256xf32> to vector<1x256xf32>
    %cst_8 = arith.constant 2.500000e-01 : f32
    %10 = vector.broadcast %cst_8 : f32 to vector<1x256xf32>
    %11 = arith.mulf %9, %10 : vector<1x256xf32>
    %c0_9 = arith.constant 0 : index
    %c128 = arith.constant 128 : index
    %12 = vector.load %arg6[%c0_9, %c128] : memref<2x435xf32, #tpu.memory_space<vmem>>, vector<1x256xf32>
    tpu.vector_store %arg6[%c0_9, %c128], %7 {strides = array<i32>} : memref<2x435xf32, #tpu.memory_space<vmem>>, vector<1x256xf32>,
    %c1 = arith.constant 1 : index
    %c128_10 = arith.constant 128 : index
    %13 = vector.load %arg6[%c1, %c128_10] : memref<2x435xf32, #tpu.memory_space<vmem>>, vector<1x256xf32>
    tpu.vector_store %arg6[%c1, %c128_10], %11 {strides = array<i32>} : memref<2x435xf32, #tpu.memory_space<vmem>>, vector<1x256xf32>,
    %c0_11 = arith.constant 0 : index
    %14 = memref.load %arg4[%c0_11] : memref<1xf32, #tpu.memory_space<smem>>
    %c0_12 = arith.constant 0 : index
    %c0_13 = arith.constant 0 : index
    %15 = vector.load %arg2[%c0_12, %c0_13] : memref<1x256xi32, #tpu.memory_space<vmem>>, vector<1x256xi32>
    %cst_14 = arith.constant 0.000000e+00 : f32
    %16 = vector.broadcast %cst_14 : f32 to vector<2x256xf32>
    %cst_15 = arith.constant 0.000000e+00 : f32
    %17 = vector.broadcast %cst_15 : f32 to vector<2x256xf32>
    %c0_16 = arith.constant 0 : index
    %c77 = arith.constant 77 : index
    %18 = vector.load %arg6[%c0_16, %c77] : memref<2x435xf32, #tpu.memory_space<vmem>>, vector<2x256xf32>
    %c0_17 = arith.constant 0 : index
    %19 = memref.load %arg3[%c0_17] : memref<98xf32, #tpu.memory_space<smem>>
    %c49 = arith.constant 49 : index
    %20 = memref.load %arg3[%c49] : memref<98xf32, #tpu.memory_space<smem>>
    %21 = vector.broadcast %19 : f32 to vector<2x256xf32>
    %22 = arith.mulf %21, %18 : vector<2x256xf32>
    %23 = vector.broadcast %20 : f32 to vector<2x256xf32>
    %24 = arith.mulf %23, %18 : vector<2x256xf32>
    %c0_18 = arith.constant 0 : index
    %c93 = arith.constant 93 : index
    %25 = vector.load %arg6[%c0_18, %c93] : memref<2x435xf32, #tpu.memory_space<vmem>>, vector<2x256xf32>
    %c7 = arith.constant 7 : index
    %26 = memref.load %arg3[%c7] : memref<98xf32, #tpu.memory_space<smem>>
    %c56 = arith.constant 56 : index
    %27 = memref.load %arg3[%c56] : memref<98xf32, #tpu.memory_space<smem>>
    %28 = vector.broadcast %26 : f32 to vector<2x256xf32>
    %29 = arith.mulf %28, %25 : vector<2x256xf32>
    %30 = vector.broadcast %27 : f32 to vector<2x256xf32>
    %31 = arith.mulf %30, %25 : vector<2x256xf32>
    %32 = arith.addf %22, %29 : vector<2x256xf32>
    %33 = arith.addf %24, %31 : vector<2x256xf32>
    %c0_19 = arith.constant 0 : index
    %c109 = arith.constant 109 : index
    %34 = vector.load %arg6[%c0_19, %c109] : memref<2x435xf32, #tpu.memory_space<vmem>>, vector<2x256xf32>
    %c14 = arith.constant 14 : index
    %35 = memref.load %arg3[%c14] : memref<98xf32, #tpu.memory_space<smem>>
    %c63 = arith.constant 63 : index
    %36 = memref.load %arg3[%c63] : memref<98xf32, #tpu.memory_space<smem>>
    %37 = vector.broadcast %35 : f32 to vector<2x256xf32>
    %38 = arith.mulf %37, %34 : vector<2x256xf32>
    %39 = vector.broadcast %36 : f32 to vector<2x256xf32>
    %40 = arith.mulf %39, %34 : vector<2x256xf32>
    %41 = arith.addf %32, %38 : vector<2x256xf32>
    %42 = arith.addf %33, %40 : vector<2x256xf32>
    %c0_20 = arith.constant 0 : index
    %c125 = arith.constant 125 : index
    %43 = vector.load %arg6[%c0_20, %c125] : memref<2x435xf32, #tpu.memory_space<vmem>>, vector<2x256xf32>
    %c21 = arith.constant 21 : index
    %44 = memref.load %arg3[%c21] : memref<98xf32, #tpu.memory_space<smem>>
    %c70 = arith.constant 70 : index
    %45 = memref.load %arg3[%c70] : memref<98xf32, #tpu.memory_space<smem>>
    %46 = vector.broadcast %44 : f32 to vector<2x256xf32>
    %47 = arith.mulf %46, %43 : vector<2x256xf32>
    %48 = vector.broadcast %45 : f32 to vector<2x256xf32>
    %49 = arith.mulf %48, %43 : vector<2x256xf32>
    %50 = arith.addf %41, %47 : vector<2x256xf32>
    %51 = arith.addf %42, %49 : vector<2x256xf32>
    %c0_21 = arith.constant 0 : index
    %c141 = arith.constant 141 : index
    %52 = vector.load %arg6[%c0_21, %c141] : memref<2x435xf32, #tpu.memory_space<vmem>>, vector<2x256xf32>
    %c28 = arith.constant 28 : index
    %53 = memref.load %arg3[%c28] : memref<98xf32, #tpu.memory_space<smem>>
    %c77_22 = arith.constant 77 : index
    %54 = memref.load %arg3[%c77_22] : memref<98xf32, #tpu.memory_space<smem>>
    %55 = vector.broadcast %53 : f32 to vector<2x256xf32>
    %56 = arith.mulf %55, %52 : vector<2x256xf32>
    %57 = vector.broadcast %54 : f32 to vector<2x256xf32>
    %58 = arith.mulf %57, %52 : vector<2x256xf32>
    %59 = arith.addf %50, %56 : vector<2x256xf32>
    %60 = arith.addf %51, %58 : vector<2x256xf32>
    %c0_23 = arith.constant 0 : index
    %c157 = arith.constant 157 : index
    %61 = vector.load %arg6[%c0_23, %c157] : memref<2x435xf32, #tpu.memory_space<vmem>>, vector<2x256xf32>
    %c35 = arith.constant 35 : index
    %62 = memref.load %arg3[%c35] : memref<98xf32, #tpu.memory_space<smem>>
    %c84 = arith.constant 84 : index
    %63 = memref.load %arg3[%c84] : memref<98xf32, #tpu.memory_space<smem>>
    %64 = vector.broadcast %62 : f32 to vector<2x256xf32>
    %65 = arith.mulf %64, %61 : vector<2x256xf32>
    %66 = vector.broadcast %63 : f32 to vector<2x256xf32>
    %67 = arith.mulf %66, %61 : vector<2x256xf32>
    %68 = arith.addf %59, %65 : vector<2x256xf32>
    %69 = arith.addf %60, %67 : vector<2x256xf32>
    %c0_24 = arith.constant 0 : index
    %c173 = arith.constant 173 : index
    %70 = vector.load %arg6[%c0_24, %c173] : memref<2x435xf32, #tpu.memory_space<vmem>>, vector<2x256xf32>
    %c42 = arith.constant 42 : index
    %71 = memref.load %arg3[%c42] : memref<98xf32, #tpu.memory_space<smem>>
    %c91 = arith.constant 91 : index
    %72 = memref.load %arg3[%c91] : memref<98xf32, #tpu.memory_space<smem>>
    %73 = vector.broadcast %71 : f32 to vector<2x256xf32>
    %74 = arith.mulf %73, %70 : vector<2x256xf32>
    %75 = vector.broadcast %72 : f32 to vector<2x256xf32>
    %76 = arith.mulf %75, %70 : vector<2x256xf32>
    %77 = arith.addf %68, %74 : vector<2x256xf32>
    %78 = arith.addf %69, %76 : vector<2x256xf32>
    %c3_i32 = arith.constant 3 : i32
    %79 = vector.broadcast %c3_i32 : i32 to vector<1x256xi32>
    %80 = arith.cmpi sge, %15, %79 : vector<1x256xi32>
    %cst_25 = arith.constant 0.000000e+00 : f32
    %81 = vector.shape_cast %80 : vector<1x256xi1> to vector<1x256xi1>
    %82 = vector.broadcast %81 : vector<1x256xi1> to vector<2x256xi1>
    %83 = vector.broadcast %cst_25 : f32 to vector<2x256xf32>
    %84 = arith.select %82, %77, %83 : vector<2x256xi1>, vector<2x256xf32>
    %cst_26 = arith.constant 0.000000e+00 : f32
    %85 = vector.shape_cast %80 : vector<1x256xi1> to vector<1x256xi1>
    %86 = vector.broadcast %85 : vector<1x256xi1> to vector<2x256xi1>
    %87 = vector.broadcast %cst_26 : f32 to vector<2x256xf32>
    %88 = arith.select %86, %78, %87 : vector<2x256xi1>, vector<2x256xf32>
    %89 = arith.addf %16, %84 : vector<2x256xf32>
    %90 = arith.addf %17, %88 : vector<2x256xf32>
    %c0_27 = arith.constant 0 : index
    %c78 = arith.constant 78 : index
    %91 = vector.load %arg6[%c0_27, %c78] : memref<2x435xf32, #tpu.memory_space<vmem>>, vector<2x256xf32>
    %c1_28 = arith.constant 1 : index
    %92 = memref.load %arg3[%c1_28] : memref<98xf32, #tpu.memory_space<smem>>
    %c50 = arith.constant 50 : index
    %93 = memref.load %arg3[%c50] : memref<98xf32, #tpu.memory_space<smem>>
    %94 = vector.broadcast %92 : f32 to vector<2x256xf32>
    %95 = arith.mulf %94, %91 : vector<2x256xf32>
    %96 = vector.broadcast %93 : f32 to vector<2x256xf32>
    %97 = arith.mulf %96, %91 : vector<2x256xf32>
    %c0_29 = arith.constant 0 : index
    %c94 = arith.constant 94 : index
    %98 = vector.load %arg6[%c0_29, %c94] : memref<2x435xf32, #tpu.memory_space<vmem>>, vector<2x256xf32>
    %c8 = arith.constant 8 : index
    %99 = memref.load %arg3[%c8] : memref<98xf32, #tpu.memory_space<smem>>
    %c57 = arith.constant 57 : index
    %100 = memref.load %arg3[%c57] : memref<98xf32, #tpu.memory_space<smem>>
    %101 = vector.broadcast %99 : f32 to vector<2x256xf32>
    %102 = arith.mulf %101, %98 : vector<2x256xf32>
    %103 = vector.broadcast %100 : f32 to vector<2x256xf32>
    %104 = arith.mulf %103, %98 : vector<2x256xf32>
    %105 = arith.addf %95, %102 : vector<2x256xf32>
    %106 = arith.addf %97, %104 : vector<2x256xf32>
    %c0_30 = arith.constant 0 : index
    %c110 = arith.constant 110 : index
    %107 = vector.load %arg6[%c0_30, %c110] : memref<2x435xf32, #tpu.memory_space<vmem>>, vector<2x256xf32>
    %c15 = arith.constant 15 : index
    %108 = memref.load %arg3[%c15] : memref<98xf32, #tpu.memory_space<smem>>
    %c64 = arith.constant 64 : index
    %109 = memref.load %arg3[%c64] : memref<98xf32, #tpu.memory_space<smem>>
    %110 = vector.broadcast %108 : f32 to vector<2x256xf32>
    %111 = arith.mulf %110, %107 : vector<2x256xf32>
    %112 = vector.broadcast %109 : f32 to vector<2x256xf32>
    %113 = arith.mulf %112, %107 : vector<2x256xf32>
    %114 = arith.addf %105, %111 : vector<2x256xf32>
    %115 = arith.addf %106, %113 : vector<2x256xf32>
    %c0_31 = arith.constant 0 : index
    %c126 = arith.constant 126 : index
    %116 = vector.load %arg6[%c0_31, %c126] : memref<2x435xf32, #tpu.memory_space<vmem>>, vector<2x256xf32>
    %c22 = arith.constant 22 : index
    %117 = memref.load %arg3[%c22] : memref<98xf32, #tpu.memory_space<smem>>
    %c71 = arith.constant 71 : index
    %118 = memref.load %arg3[%c71] : memref<98xf32, #tpu.memory_space<smem>>
    %119 = vector.broadcast %117 : f32 to vector<2x256xf32>
    %120 = arith.mulf %119, %116 : vector<2x256xf32>
    %121 = vector.broadcast %118 : f32 to vector<2x256xf32>
    %122 = arith.mulf %121, %116 : vector<2x256xf32>
    %123 = arith.addf %114, %120 : vector<2x256xf32>
    %124 = arith.addf %115, %122 : vector<2x256xf32>
    %c0_32 = arith.constant 0 : index
    %c142 = arith.constant 142 : index
    %125 = vector.load %arg6[%c0_32, %c142] : memref<2x435xf32, #tpu.memory_space<vmem>>, vector<2x256xf32>
    %c29 = arith.constant 29 : index
    %126 = memref.load %arg3[%c29] : memref<98xf32, #tpu.memory_space<smem>>
    %c78_33 = arith.constant 78 : index
    %127 = memref.load %arg3[%c78_33] : memref<98xf32, #tpu.memory_space<smem>>
    %128 = vector.broadcast %126 : f32 to vector<2x256xf32>
    %129 = arith.mulf %128, %125 : vector<2x256xf32>
    %130 = vector.broadcast %127 : f32 to vector<2x256xf32>
    %131 = arith.mulf %130, %125 : vector<2x256xf32>
    %132 = arith.addf %123, %129 : vector<2x256xf32>
    %133 = arith.addf %124, %131 : vector<2x256xf32>
    %c0_34 = arith.constant 0 : index
    %c158 = arith.constant 158 : index
    %134 = vector.load %arg6[%c0_34, %c158] : memref<2x435xf32, #tpu.memory_space<vmem>>, vector<2x256xf32>
    %c36 = arith.constant 36 : index
    %135 = memref.load %arg3[%c36] : memref<98xf32, #tpu.memory_space<smem>>
    %c85 = arith.constant 85 : index
    %136 = memref.load %arg3[%c85] : memref<98xf32, #tpu.memory_space<smem>>
    %137 = vector.broadcast %135 : f32 to vector<2x256xf32>
    %138 = arith.mulf %137, %134 : vector<2x256xf32>
    %139 = vector.broadcast %136 : f32 to vector<2x256xf32>
    %140 = arith.mulf %139, %134 : vector<2x256xf32>
    %141 = arith.addf %132, %138 : vector<2x256xf32>
    %142 = arith.addf %133, %140 : vector<2x256xf32>
    %c0_35 = arith.constant 0 : index
    %c174 = arith.constant 174 : index
    %143 = vector.load %arg6[%c0_35, %c174] : memref<2x435xf32, #tpu.memory_space<vmem>>, vector<2x256xf32>
    %c43 = arith.constant 43 : index
    %144 = memref.load %arg3[%c43] : memref<98xf32, #tpu.memory_space<smem>>
    %c92 = arith.constant 92 : index
    %145 = memref.load %arg3[%c92] : memref<98xf32, #tpu.memory_space<smem>>
    %146 = vector.broadcast %144 : f32 to vector<2x256xf32>
    %147 = arith.mulf %146, %143 : vector<2x256xf32>
    %148 = vector.broadcast %145 : f32 to vector<2x256xf32>
    %149 = arith.mulf %148, %143 : vector<2x256xf32>
    %150 = arith.addf %141, %147 : vector<2x256xf32>
    %151 = arith.addf %142, %149 : vector<2x256xf32>
    %c2_i32 = arith.constant 2 : i32
    %152 = vector.broadcast %c2_i32 : i32 to vector<1x256xi32>
    %153 = arith.cmpi sge, %15, %152 : vector<1x256xi32>
    %cst_36 = arith.constant 0.000000e+00 : f32
    %154 = vector.shape_cast %153 : vector<1x256xi1> to vector<1x256xi1>
    %155 = vector.broadcast %154 : vector<1x256xi1> to vector<2x256xi1>
    %156 = vector.broadcast %cst_36 : f32 to vector<2x256xf32>
    %157 = arith.select %155, %150, %156 : vector<2x256xi1>, vector<2x256xf32>
    %cst_37 = arith.constant 0.000000e+00 : f32
    %158 = vector.shape_cast %153 : vector<1x256xi1> to vector<1x256xi1>
    %159 = vector.broadcast %158 : vector<1x256xi1> to vector<2x256xi1>
    %160 = vector.broadcast %cst_37 : f32 to vector<2x256xf32>
    %161 = arith.select %159, %151, %160 : vector<2x256xi1>, vector<2x256xf32>
    %162 = arith.addf %89, %157 : vector<2x256xf32>
    %163 = arith.addf %90, %161 : vector<2x256xf32>
    %c0_38 = arith.constant 0 : index
    %c79 = arith.constant 79 : index
    %164 = vector.load %arg6[%c0_38, %c79] : memref<2x435xf32, #tpu.memory_space<vmem>>, vector<2x256xf32>
    %c2 = arith.constant 2 : index
    %165 = memref.load %arg3[%c2] : memref<98xf32, #tpu.memory_space<smem>>
    %c51 = arith.constant 51 : index
    %166 = memref.load %arg3[%c51] : memref<98xf32, #tpu.memory_space<smem>>
    %167 = vector.broadcast %165 : f32 to vector<2x256xf32>
    %168 = arith.mulf %167, %164 : vector<2x256xf32>
    %169 = vector.broadcast %166 : f32 to vector<2x256xf32>
    %170 = arith.mulf %169, %164 : vector<2x256xf32>
    %c0_39 = arith.constant 0 : index
    %c95 = arith.constant 95 : index
    %171 = vector.load %arg6[%c0_39, %c95] : memref<2x435xf32, #tpu.memory_space<vmem>>, vector<2x256xf32>
    %c9 = arith.constant 9 : index
    %172 = memref.load %arg3[%c9] : memref<98xf32, #tpu.memory_space<smem>>
    %c58 = arith.constant 58 : index
    %173 = memref.load %arg3[%c58] : memref<98xf32, #tpu.memory_space<smem>>
    %174 = vector.broadcast %172 : f32 to vector<2x256xf32>
    %175 = arith.mulf %174, %171 : vector<2x256xf32>
    %176 = vector.broadcast %173 : f32 to vector<2x256xf32>
    %177 = arith.mulf %176, %171 : vector<2x256xf32>
    %178 = arith.addf %168, %175 : vector<2x256xf32>
    %179 = arith.addf %170, %177 : vector<2x256xf32>
    %c0_40 = arith.constant 0 : index
    %c111 = arith.constant 111 : index
    %180 = vector.load %arg6[%c0_40, %c111] : memref<2x435xf32, #tpu.memory_space<vmem>>, vector<2x256xf32>
    %c16 = arith.constant 16 : index
    %181 = memref.load %arg3[%c16] : memref<98xf32, #tpu.memory_space<smem>>
    %c65 = arith.constant 65 : index
    %182 = memref.load %arg3[%c65] : memref<98xf32, #tpu.memory_space<smem>>
    %183 = vector.broadcast %181 : f32 to vector<2x256xf32>
    %184 = arith.mulf %183, %180 : vector<2x256xf32>
    %185 = vector.broadcast %182 : f32 to vector<2x256xf32>
    %186 = arith.mulf %185, %180 : vector<2x256xf32>
    %187 = arith.addf %178, %184 : vector<2x256xf32>
    %188 = arith.addf %179, %186 : vector<2x256xf32>
    %c0_41 = arith.constant 0 : index
    %c127 = arith.constant 127 : index
    %189 = vector.load %arg6[%c0_41, %c127] : memref<2x435xf32, #tpu.memory_space<vmem>>, vector<2x256xf32>
    %c23 = arith.constant 23 : index
    %190 = memref.load %arg3[%c23] : memref<98xf32, #tpu.memory_space<smem>>
    %c72 = arith.constant 72 : index
    %191 = memref.load %arg3[%c72] : memref<98xf32, #tpu.memory_space<smem>>
    %192 = vector.broadcast %190 : f32 to vector<2x256xf32>
    %193 = arith.mulf %192, %189 : vector<2x256xf32>
    %194 = vector.broadcast %191 : f32 to vector<2x256xf32>
    %195 = arith.mulf %194, %189 : vector<2x256xf32>
    %196 = arith.addf %187, %193 : vector<2x256xf32>
    %197 = arith.addf %188, %195 : vector<2x256xf32>
    %c0_42 = arith.constant 0 : index
    %c143 = arith.constant 143 : index
    %198 = vector.load %arg6[%c0_42, %c143] : memref<2x435xf32, #tpu.memory_space<vmem>>, vector<2x256xf32>
    %c30 = arith.constant 30 : index
    %199 = memref.load %arg3[%c30] : memref<98xf32, #tpu.memory_space<smem>>
    %c79_43 = arith.constant 79 : index
    %200 = memref.load %arg3[%c79_43] : memref<98xf32, #tpu.memory_space<smem>>
    %201 = vector.broadcast %199 : f32 to vector<2x256xf32>
    %202 = arith.mulf %201, %198 : vector<2x256xf32>
    %203 = vector.broadcast %200 : f32 to vector<2x256xf32>
    %204 = arith.mulf %203, %198 : vector<2x256xf32>
    %205 = arith.addf %196, %202 : vector<2x256xf32>
    %206 = arith.addf %197, %204 : vector<2x256xf32>
    %c0_44 = arith.constant 0 : index
    %c159 = arith.constant 159 : index
    %207 = vector.load %arg6[%c0_44, %c159] : memref<2x435xf32, #tpu.memory_space<vmem>>, vector<2x256xf32>
    %c37 = arith.constant 37 : index
    %208 = memref.load %arg3[%c37] : memref<98xf32, #tpu.memory_space<smem>>
    %c86 = arith.constant 86 : index
    %209 = memref.load %arg3[%c86] : memref<98xf32, #tpu.memory_space<smem>>
    %210 = vector.broadcast %208 : f32 to vector<2x256xf32>
    %211 = arith.mulf %210, %207 : vector<2x256xf32>
    %212 = vector.broadcast %209 : f32 to vector<2x256xf32>
    %213 = arith.mulf %212, %207 : vector<2x256xf32>
    %214 = arith.addf %205, %211 : vector<2x256xf32>
    %215 = arith.addf %206, %213 : vector<2x256xf32>
    %c0_45 = arith.constant 0 : index
    %c175 = arith.constant 175 : index
    %216 = vector.load %arg6[%c0_45, %c175] : memref<2x435xf32, #tpu.memory_space<vmem>>, vector<2x256xf32>
    %c44 = arith.constant 44 : index
    %217 = memref.load %arg3[%c44] : memref<98xf32, #tpu.memory_space<smem>>
    %c93_46 = arith.constant 93 : index
    %218 = memref.load %arg3[%c93_46] : memref<98xf32, #tpu.memory_space<smem>>
    %219 = vector.broadcast %217 : f32 to vector<2x256xf32>
    %220 = arith.mulf %219, %216 : vector<2x256xf32>
    %221 = vector.broadcast %218 : f32 to vector<2x256xf32>
    %222 = arith.mulf %221, %216 : vector<2x256xf32>
    %223 = arith.addf %214, %220 : vector<2x256xf32>
    %224 = arith.addf %215, %222 : vector<2x256xf32>
    %c1_i32 = arith.constant 1 : i32
    %225 = vector.broadcast %c1_i32 : i32 to vector<1x256xi32>
    %226 = arith.cmpi sge, %15, %225 : vector<1x256xi32>
    %cst_47 = arith.constant 0.000000e+00 : f32
    %227 = vector.shape_cast %226 : vector<1x256xi1> to vector<1x256xi1>
    %228 = vector.broadcast %227 : vector<1x256xi1> to vector<2x256xi1>
    %229 = vector.broadcast %cst_47 : f32 to vector<2x256xf32>
    %230 = arith.select %228, %223, %229 : vector<2x256xi1>, vector<2x256xf32>
    %cst_48 = arith.constant 0.000000e+00 : f32
    %231 = vector.shape_cast %226 : vector<1x256xi1> to vector<1x256xi1>
    %232 = vector.broadcast %231 : vector<1x256xi1> to vector<2x256xi1>
    %233 = vector.broadcast %cst_48 : f32 to vector<2x256xf32>
    %234 = arith.select %232, %224, %233 : vector<2x256xi1>, vector<2x256xf32>
    %235 = arith.addf %162, %230 : vector<2x256xf32>
    %236 = arith.addf %163, %234 : vector<2x256xf32>
    %c0_49 = arith.constant 0 : index
    %c80 = arith.constant 80 : index
    %237 = vector.load %arg6[%c0_49, %c80] : memref<2x435xf32, #tpu.memory_space<vmem>>, vector<2x256xf32>
    %c3 = arith.constant 3 : index
    %238 = memref.load %arg3[%c3] : memref<98xf32, #tpu.memory_space<smem>>
    %c52 = arith.constant 52 : index
    %239 = memref.load %arg3[%c52] : memref<98xf32, #tpu.memory_space<smem>>
    %240 = vector.broadcast %238 : f32 to vector<2x256xf32>
    %241 = arith.mulf %240, %237 : vector<2x256xf32>
    %242 = vector.broadcast %239 : f32 to vector<2x256xf32>
    %243 = arith.mulf %242, %237 : vector<2x256xf32>
    %c0_50 = arith.constant 0 : index
    %c96 = arith.constant 96 : index
    %244 = vector.load %arg6[%c0_50, %c96] : memref<2x435xf32, #tpu.memory_space<vmem>>, vector<2x256xf32>
    %c10 = arith.constant 10 : index
    %245 = memref.load %arg3[%c10] : memref<98xf32, #tpu.memory_space<smem>>
    %c59 = arith.constant 59 : index
    %246 = memref.load %arg3[%c59] : memref<98xf32, #tpu.memory_space<smem>>
    %247 = vector.broadcast %245 : f32 to vector<2x256xf32>
    %248 = arith.mulf %247, %244 : vector<2x256xf32>
    %249 = vector.broadcast %246 : f32 to vector<2x256xf32>
    %250 = arith.mulf %249, %244 : vector<2x256xf32>
    %251 = arith.addf %241, %248 : vector<2x256xf32>
    %252 = arith.addf %243, %250 : vector<2x256xf32>
    %c0_51 = arith.constant 0 : index
    %c112 = arith.constant 112 : index
    %253 = vector.load %arg6[%c0_51, %c112] : memref<2x435xf32, #tpu.memory_space<vmem>>, vector<2x256xf32>
    %c17 = arith.constant 17 : index
    %254 = memref.load %arg3[%c17] : memref<98xf32, #tpu.memory_space<smem>>
    %c66 = arith.constant 66 : index
    %255 = memref.load %arg3[%c66] : memref<98xf32, #tpu.memory_space<smem>>
    %256 = vector.broadcast %254 : f32 to vector<2x256xf32>
    %257 = arith.mulf %256, %253 : vector<2x256xf32>
    %258 = vector.broadcast %255 : f32 to vector<2x256xf32>
    %259 = arith.mulf %258, %253 : vector<2x256xf32>
    %260 = arith.addf %251, %257 : vector<2x256xf32>
    %261 = arith.addf %252, %259 : vector<2x256xf32>
    %c0_52 = arith.constant 0 : index
    %c128_53 = arith.constant 128 : index
    %262 = vector.load %arg6[%c0_52, %c128_53] : memref<2x435xf32, #tpu.memory_space<vmem>>, vector<2x256xf32>
    %c24 = arith.constant 24 : index
    %263 = memref.load %arg3[%c24] : memref<98xf32, #tpu.memory_space<smem>>
    %c73 = arith.constant 73 : index
    %264 = memref.load %arg3[%c73] : memref<98xf32, #tpu.memory_space<smem>>
    %265 = vector.broadcast %263 : f32 to vector<2x256xf32>
    %266 = arith.mulf %265, %262 : vector<2x256xf32>
    %267 = vector.broadcast %264 : f32 to vector<2x256xf32>
    %268 = arith.mulf %267, %262 : vector<2x256xf32>
    %269 = arith.addf %260, %266 : vector<2x256xf32>
    %270 = arith.addf %261, %268 : vector<2x256xf32>
    %c0_54 = arith.constant 0 : index
    %c144 = arith.constant 144 : index
    %271 = vector.load %arg6[%c0_54, %c144] : memref<2x435xf32, #tpu.memory_space<vmem>>, vector<2x256xf32>
    %c31 = arith.constant 31 : index
    %272 = memref.load %arg3[%c31] : memref<98xf32, #tpu.memory_space<smem>>
    %c80_55 = arith.constant 80 : index
    %273 = memref.load %arg3[%c80_55] : memref<98xf32, #tpu.memory_space<smem>>
    %274 = vector.broadcast %272 : f32 to vector<2x256xf32>
    %275 = arith.mulf %274, %271 : vector<2x256xf32>
    %276 = vector.broadcast %273 : f32 to vector<2x256xf32>
    %277 = arith.mulf %276, %271 : vector<2x256xf32>
    %278 = arith.addf %269, %275 : vector<2x256xf32>
    %279 = arith.addf %270, %277 : vector<2x256xf32>
    %c0_56 = arith.constant 0 : index
    %c160 = arith.constant 160 : index
    %280 = vector.load %arg6[%c0_56, %c160] : memref<2x435xf32, #tpu.memory_space<vmem>>, vector<2x256xf32>
    %c38 = arith.constant 38 : index
    %281 = memref.load %arg3[%c38] : memref<98xf32, #tpu.memory_space<smem>>
    %c87 = arith.constant 87 : index
    %282 = memref.load %arg3[%c87] : memref<98xf32, #tpu.memory_space<smem>>
    %283 = vector.broadcast %281 : f32 to vector<2x256xf32>
    %284 = arith.mulf %283, %280 : vector<2x256xf32>
    %285 = vector.broadcast %282 : f32 to vector<2x256xf32>
    %286 = arith.mulf %285, %280 : vector<2x256xf32>
    %287 = arith.addf %278, %284 : vector<2x256xf32>
    %288 = arith.addf %279, %286 : vector<2x256xf32>
    %c0_57 = arith.constant 0 : index
    %c176 = arith.constant 176 : index
    %289 = vector.load %arg6[%c0_57, %c176] : memref<2x435xf32, #tpu.memory_space<vmem>>, vector<2x256xf32>
    %c45 = arith.constant 45 : index
    %290 = memref.load %arg3[%c45] : memref<98xf32, #tpu.memory_space<smem>>
    %c94_58 = arith.constant 94 : index
    %291 = memref.load %arg3[%c94_58] : memref<98xf32, #tpu.memory_space<smem>>
    %292 = vector.broadcast %290 : f32 to vector<2x256xf32>
    %293 = arith.mulf %292, %289 : vector<2x256xf32>
    %294 = vector.broadcast %291 : f32 to vector<2x256xf32>
    %295 = arith.mulf %294, %289 : vector<2x256xf32>
    %296 = arith.addf %287, %293 : vector<2x256xf32>
    %297 = arith.addf %288, %295 : vector<2x256xf32>
    %298 = arith.addf %235, %296 : vector<2x256xf32>
    %299 = arith.addf %236, %297 : vector<2x256xf32>
    %c0_59 = arith.constant 0 : index
    %c81 = arith.constant 81 : index
    %300 = vector.load %arg6[%c0_59, %c81] : memref<2x435xf32, #tpu.memory_space<vmem>>, vector<2x256xf32>
    %c4 = arith.constant 4 : index
    %301 = memref.load %arg3[%c4] : memref<98xf32, #tpu.memory_space<smem>>
    %c53 = arith.constant 53 : index
    %302 = memref.load %arg3[%c53] : memref<98xf32, #tpu.memory_space<smem>>
    %303 = vector.broadcast %301 : f32 to vector<2x256xf32>
    %304 = arith.mulf %303, %300 : vector<2x256xf32>
    %305 = vector.broadcast %302 : f32 to vector<2x256xf32>
    %306 = arith.mulf %305, %300 : vector<2x256xf32>
    %c0_60 = arith.constant 0 : index
    %c97 = arith.constant 97 : index
    %307 = vector.load %arg6[%c0_60, %c97] : memref<2x435xf32, #tpu.memory_space<vmem>>, vector<2x256xf32>
    %c11 = arith.constant 11 : index
    %308 = memref.load %arg3[%c11] : memref<98xf32, #tpu.memory_space<smem>>
    %c60 = arith.constant 60 : index
    %309 = memref.load %arg3[%c60] : memref<98xf32, #tpu.memory_space<smem>>
    %310 = vector.broadcast %308 : f32 to vector<2x256xf32>
    %311 = arith.mulf %310, %307 : vector<2x256xf32>
    %312 = vector.broadcast %309 : f32 to vector<2x256xf32>
    %313 = arith.mulf %312, %307 : vector<2x256xf32>
    %314 = arith.addf %304, %311 : vector<2x256xf32>
    %315 = arith.addf %306, %313 : vector<2x256xf32>
    %c0_61 = arith.constant 0 : index
    %c113 = arith.constant 113 : index
    %316 = vector.load %arg6[%c0_61, %c113] : memref<2x435xf32, #tpu.memory_space<vmem>>, vector<2x256xf32>
    %c18 = arith.constant 18 : index
    %317 = memref.load %arg3[%c18] : memref<98xf32, #tpu.memory_space<smem>>
    %c67 = arith.constant 67 : index
    %318 = memref.load %arg3[%c67] : memref<98xf32, #tpu.memory_space<smem>>
    %319 = vector.broadcast %317 : f32 to vector<2x256xf32>
    %320 = arith.mulf %319, %316 : vector<2x256xf32>
    %321 = vector.broadcast %318 : f32 to vector<2x256xf32>
    %322 = arith.mulf %321, %316 : vector<2x256xf32>
    %323 = arith.addf %314, %320 : vector<2x256xf32>
    %324 = arith.addf %315, %322 : vector<2x256xf32>
    %c0_62 = arith.constant 0 : index
    %c129 = arith.constant 129 : index
    %325 = vector.load %arg6[%c0_62, %c129] : memref<2x435xf32, #tpu.memory_space<vmem>>, vector<2x256xf32>
    %c25 = arith.constant 25 : index
    %326 = memref.load %arg3[%c25] : memref<98xf32, #tpu.memory_space<smem>>
    %c74 = arith.constant 74 : index
    %327 = memref.load %arg3[%c74] : memref<98xf32, #tpu.memory_space<smem>>
    %328 = vector.broadcast %326 : f32 to vector<2x256xf32>
    %329 = arith.mulf %328, %325 : vector<2x256xf32>
    %330 = vector.broadcast %327 : f32 to vector<2x256xf32>
    %331 = arith.mulf %330, %325 : vector<2x256xf32>
    %332 = arith.addf %323, %329 : vector<2x256xf32>
    %333 = arith.addf %324, %331 : vector<2x256xf32>
    %c0_63 = arith.constant 0 : index
    %c145 = arith.constant 145 : index
    %334 = vector.load %arg6[%c0_63, %c145] : memref<2x435xf32, #tpu.memory_space<vmem>>, vector<2x256xf32>
    %c32 = arith.constant 32 : index
    %335 = memref.load %arg3[%c32] : memref<98xf32, #tpu.memory_space<smem>>
    %c81_64 = arith.constant 81 : index
    %336 = memref.load %arg3[%c81_64] : memref<98xf32, #tpu.memory_space<smem>>
    %337 = vector.broadcast %335 : f32 to vector<2x256xf32>
    %338 = arith.mulf %337, %334 : vector<2x256xf32>
    %339 = vector.broadcast %336 : f32 to vector<2x256xf32>
    %340 = arith.mulf %339, %334 : vector<2x256xf32>
    %341 = arith.addf %332, %338 : vector<2x256xf32>
    %342 = arith.addf %333, %340 : vector<2x256xf32>
    %c0_65 = arith.constant 0 : index
    %c161 = arith.constant 161 : index
    %343 = vector.load %arg6[%c0_65, %c161] : memref<2x435xf32, #tpu.memory_space<vmem>>, vector<2x256xf32>
    %c39 = arith.constant 39 : index
    %344 = memref.load %arg3[%c39] : memref<98xf32, #tpu.memory_space<smem>>
    %c88 = arith.constant 88 : index
    %345 = memref.load %arg3[%c88] : memref<98xf32, #tpu.memory_space<smem>>
    %346 = vector.broadcast %344 : f32 to vector<2x256xf32>
    %347 = arith.mulf %346, %343 : vector<2x256xf32>
    %348 = vector.broadcast %345 : f32 to vector<2x256xf32>
    %349 = arith.mulf %348, %343 : vector<2x256xf32>
    %350 = arith.addf %341, %347 : vector<2x256xf32>
    %351 = arith.addf %342, %349 : vector<2x256xf32>
    %c0_66 = arith.constant 0 : index
    %c177 = arith.constant 177 : index
    %352 = vector.load %arg6[%c0_66, %c177] : memref<2x435xf32, #tpu.memory_space<vmem>>, vector<2x256xf32>
    %c46 = arith.constant 46 : index
    %353 = memref.load %arg3[%c46] : memref<98xf32, #tpu.memory_space<smem>>
    %c95_67 = arith.constant 95 : index
    %354 = memref.load %arg3[%c95_67] : memref<98xf32, #tpu.memory_space<smem>>
    %355 = vector.broadcast %353 : f32 to vector<2x256xf32>
    %356 = arith.mulf %355, %352 : vector<2x256xf32>
    %357 = vector.broadcast %354 : f32 to vector<2x256xf32>
    %358 = arith.mulf %357, %352 : vector<2x256xf32>
    %359 = arith.addf %350, %356 : vector<2x256xf32>
    %360 = arith.addf %351, %358 : vector<2x256xf32>
    %c15_i32 = arith.constant 15 : i32
    %361 = vector.broadcast %c15_i32 : i32 to vector<1x256xi32>
    %362 = arith.cmpi slt, %15, %361 : vector<1x256xi32>
    %cst_68 = arith.constant 0.000000e+00 : f32
    %363 = vector.shape_cast %362 : vector<1x256xi1> to vector<1x256xi1>
    %364 = vector.broadcast %363 : vector<1x256xi1> to vector<2x256xi1>
    %365 = vector.broadcast %cst_68 : f32 to vector<2x256xf32>
    %366 = arith.select %364, %359, %365 : vector<2x256xi1>, vector<2x256xf32>
    %cst_69 = arith.constant 0.000000e+00 : f32
    %367 = vector.shape_cast %362 : vector<1x256xi1> to vector<1x256xi1>
    %368 = vector.broadcast %367 : vector<1x256xi1> to vector<2x256xi1>
    %369 = vector.broadcast %cst_69 : f32 to vector<2x256xf32>
    %370 = arith.select %368, %360, %369 : vector<2x256xi1>, vector<2x256xf32>
    %371 = arith.addf %298, %366 : vector<2x256xf32>
    %372 = arith.addf %299, %370 : vector<2x256xf32>
    %c0_70 = arith.constant 0 : index
    %c82 = arith.constant 82 : index
    %373 = vector.load %arg6[%c0_70, %c82] : memref<2x435xf32, #tpu.memory_space<vmem>>, vector<2x256xf32>
    %c5 = arith.constant 5 : index
    %374 = memref.load %arg3[%c5] : memref<98xf32, #tpu.memory_space<smem>>
    %c54 = arith.constant 54 : index
    %375 = memref.load %arg3[%c54] : memref<98xf32, #tpu.memory_space<smem>>
    %376 = vector.broadcast %374 : f32 to vector<2x256xf32>
    %377 = arith.mulf %376, %373 : vector<2x256xf32>
    %378 = vector.broadcast %375 : f32 to vector<2x256xf32>
    %379 = arith.mulf %378, %373 : vector<2x256xf32>
    %c0_71 = arith.constant 0 : index
    %c98 = arith.constant 98 : index
    %380 = vector.load %arg6[%c0_71, %c98] : memref<2x435xf32, #tpu.memory_space<vmem>>, vector<2x256xf32>
    %c12 = arith.constant 12 : index
    %381 = memref.load %arg3[%c12] : memref<98xf32, #tpu.memory_space<smem>>
    %c61 = arith.constant 61 : index
    %382 = memref.load %arg3[%c61] : memref<98xf32, #tpu.memory_space<smem>>
    %383 = vector.broadcast %381 : f32 to vector<2x256xf32>
    %384 = arith.mulf %383, %380 : vector<2x256xf32>
    %385 = vector.broadcast %382 : f32 to vector<2x256xf32>
    %386 = arith.mulf %385, %380 : vector<2x256xf32>
    %387 = arith.addf %377, %384 : vector<2x256xf32>
    %388 = arith.addf %379, %386 : vector<2x256xf32>
    %c0_72 = arith.constant 0 : index
    %c114 = arith.constant 114 : index
    %389 = vector.load %arg6[%c0_72, %c114] : memref<2x435xf32, #tpu.memory_space<vmem>>, vector<2x256xf32>
    %c19 = arith.constant 19 : index
    %390 = memref.load %arg3[%c19] : memref<98xf32, #tpu.memory_space<smem>>
    %c68 = arith.constant 68 : index
    %391 = memref.load %arg3[%c68] : memref<98xf32, #tpu.memory_space<smem>>
    %392 = vector.broadcast %390 : f32 to vector<2x256xf32>
    %393 = arith.mulf %392, %389 : vector<2x256xf32>
    %394 = vector.broadcast %391 : f32 to vector<2x256xf32>
    %395 = arith.mulf %394, %389 : vector<2x256xf32>
    %396 = arith.addf %387, %393 : vector<2x256xf32>
    %397 = arith.addf %388, %395 : vector<2x256xf32>
    %c0_73 = arith.constant 0 : index
    %c130 = arith.constant 130 : index
    %398 = vector.load %arg6[%c0_73, %c130] : memref<2x435xf32, #tpu.memory_space<vmem>>, vector<2x256xf32>
    %c26 = arith.constant 26 : index
    %399 = memref.load %arg3[%c26] : memref<98xf32, #tpu.memory_space<smem>>
    %c75 = arith.constant 75 : index
    %400 = memref.load %arg3[%c75] : memref<98xf32, #tpu.memory_space<smem>>
    %401 = vector.broadcast %399 : f32 to vector<2x256xf32>
    %402 = arith.mulf %401, %398 : vector<2x256xf32>
    %403 = vector.broadcast %400 : f32 to vector<2x256xf32>
    %404 = arith.mulf %403, %398 : vector<2x256xf32>
    %405 = arith.addf %396, %402 : vector<2x256xf32>
    %406 = arith.addf %397, %404 : vector<2x256xf32>
    %c0_74 = arith.constant 0 : index
    %c146 = arith.constant 146 : index
    %407 = vector.load %arg6[%c0_74, %c146] : memref<2x435xf32, #tpu.memory_space<vmem>>, vector<2x256xf32>
    %c33 = arith.constant 33 : index
    %408 = memref.load %arg3[%c33] : memref<98xf32, #tpu.memory_space<smem>>
    %c82_75 = arith.constant 82 : index
    %409 = memref.load %arg3[%c82_75] : memref<98xf32, #tpu.memory_space<smem>>
    %410 = vector.broadcast %408 : f32 to vector<2x256xf32>
    %411 = arith.mulf %410, %407 : vector<2x256xf32>
    %412 = vector.broadcast %409 : f32 to vector<2x256xf32>
    %413 = arith.mulf %412, %407 : vector<2x256xf32>
    %414 = arith.addf %405, %411 : vector<2x256xf32>
    %415 = arith.addf %406, %413 : vector<2x256xf32>
    %c0_76 = arith.constant 0 : index
    %c162 = arith.constant 162 : index
    %416 = vector.load %arg6[%c0_76, %c162] : memref<2x435xf32, #tpu.memory_space<vmem>>, vector<2x256xf32>
    %c40 = arith.constant 40 : index
    %417 = memref.load %arg3[%c40] : memref<98xf32, #tpu.memory_space<smem>>
    %c89 = arith.constant 89 : index
    %418 = memref.load %arg3[%c89] : memref<98xf32, #tpu.memory_space<smem>>
    %419 = vector.broadcast %417 : f32 to vector<2x256xf32>
    %420 = arith.mulf %419, %416 : vector<2x256xf32>
    %421 = vector.broadcast %418 : f32 to vector<2x256xf32>
    %422 = arith.mulf %421, %416 : vector<2x256xf32>
    %423 = arith.addf %414, %420 : vector<2x256xf32>
    %424 = arith.addf %415, %422 : vector<2x256xf32>
    %c0_77 = arith.constant 0 : index
    %c178 = arith.constant 178 : index
    %425 = vector.load %arg6[%c0_77, %c178] : memref<2x435xf32, #tpu.memory_space<vmem>>, vector<2x256xf32>
    %c47 = arith.constant 47 : index
    %426 = memref.load %arg3[%c47] : memref<98xf32, #tpu.memory_space<smem>>
    %c96_78 = arith.constant 96 : index
    %427 = memref.load %arg3[%c96_78] : memref<98xf32, #tpu.memory_space<smem>>
    %428 = vector.broadcast %426 : f32 to vector<2x256xf32>
    %429 = arith.mulf %428, %425 : vector<2x256xf32>
    %430 = vector.broadcast %427 : f32 to vector<2x256xf32>
    %431 = arith.mulf %430, %425 : vector<2x256xf32>
    %432 = arith.addf %423, %429 : vector<2x256xf32>
    %433 = arith.addf %424, %431 : vector<2x256xf32>
    %c14_i32 = arith.constant 14 : i32
    %434 = vector.broadcast %c14_i32 : i32 to vector<1x256xi32>
    %435 = arith.cmpi slt, %15, %434 : vector<1x256xi32>
    %cst_79 = arith.constant 0.000000e+00 : f32
    %436 = vector.shape_cast %435 : vector<1x256xi1> to vector<1x256xi1>
    %437 = vector.broadcast %436 : vector<1x256xi1> to vector<2x256xi1>
    %438 = vector.broadcast %cst_79 : f32 to vector<2x256xf32>
    %439 = arith.select %437, %432, %438 : vector<2x256xi1>, vector<2x256xf32>
    %cst_80 = arith.constant 0.000000e+00 : f32
    %440 = vector.shape_cast %435 : vector<1x256xi1> to vector<1x256xi1>
    %441 = vector.broadcast %440 : vector<1x256xi1> to vector<2x256xi1>
    %442 = vector.broadcast %cst_80 : f32 to vector<2x256xf32>
    %443 = arith.select %441, %433, %442 : vector<2x256xi1>, vector<2x256xf32>
    %444 = arith.addf %371, %439 : vector<2x256xf32>
    %445 = arith.addf %372, %443 : vector<2x256xf32>
    %c0_81 = arith.constant 0 : index
    %c83 = arith.constant 83 : index
    %446 = vector.load %arg6[%c0_81, %c83] : memref<2x435xf32, #tpu.memory_space<vmem>>, vector<2x256xf32>
    %c6 = arith.constant 6 : index
    %447 = memref.load %arg3[%c6] : memref<98xf32, #tpu.memory_space<smem>>
    %c55 = arith.constant 55 : index
    %448 = memref.load %arg3[%c55] : memref<98xf32, #tpu.memory_space<smem>>
    %449 = vector.broadcast %447 : f32 to vector<2x256xf32>
    %450 = arith.mulf %449, %446 : vector<2x256xf32>
    %451 = vector.broadcast %448 : f32 to vector<2x256xf32>
    %452 = arith.mulf %451, %446 : vector<2x256xf32>
    %c0_82 = arith.constant 0 : index
    %c99 = arith.constant 99 : index
    %453 = vector.load %arg6[%c0_82, %c99] : memref<2x435xf32, #tpu.memory_space<vmem>>, vector<2x256xf32>
    %c13 = arith.constant 13 : index
    %454 = memref.load %arg3[%c13] : memref<98xf32, #tpu.memory_space<smem>>
    %c62 = arith.constant 62 : index
    %455 = memref.load %arg3[%c62] : memref<98xf32, #tpu.memory_space<smem>>
    %456 = vector.broadcast %454 : f32 to vector<2x256xf32>
    %457 = arith.mulf %456, %453 : vector<2x256xf32>
    %458 = vector.broadcast %455 : f32 to vector<2x256xf32>
    %459 = arith.mulf %458, %453 : vector<2x256xf32>
    %460 = arith.addf %450, %457 : vector<2x256xf32>
    %461 = arith.addf %452, %459 : vector<2x256xf32>
    %c0_83 = arith.constant 0 : index
    %c115 = arith.constant 115 : index
    %462 = vector.load %arg6[%c0_83, %c115] : memref<2x435xf32, #tpu.memory_space<vmem>>, vector<2x256xf32>
    %c20 = arith.constant 20 : index
    %463 = memref.load %arg3[%c20] : memref<98xf32, #tpu.memory_space<smem>>
    %c69 = arith.constant 69 : index
    %464 = memref.load %arg3[%c69] : memref<98xf32, #tpu.memory_space<smem>>
    %465 = vector.broadcast %463 : f32 to vector<2x256xf32>
    %466 = arith.mulf %465, %462 : vector<2x256xf32>
    %467 = vector.broadcast %464 : f32 to vector<2x256xf32>
    %468 = arith.mulf %467, %462 : vector<2x256xf32>
    %469 = arith.addf %460, %466 : vector<2x256xf32>
    %470 = arith.addf %461, %468 : vector<2x256xf32>
    %c0_84 = arith.constant 0 : index
    %c131 = arith.constant 131 : index
    %471 = vector.load %arg6[%c0_84, %c131] : memref<2x435xf32, #tpu.memory_space<vmem>>, vector<2x256xf32>
    %c27 = arith.constant 27 : index
    %472 = memref.load %arg3[%c27] : memref<98xf32, #tpu.memory_space<smem>>
    %c76 = arith.constant 76 : index
    %473 = memref.load %arg3[%c76] : memref<98xf32, #tpu.memory_space<smem>>
    %474 = vector.broadcast %472 : f32 to vector<2x256xf32>
    %475 = arith.mulf %474, %471 : vector<2x256xf32>
    %476 = vector.broadcast %473 : f32 to vector<2x256xf32>
    %477 = arith.mulf %476, %471 : vector<2x256xf32>
    %478 = arith.addf %469, %475 : vector<2x256xf32>
    %479 = arith.addf %470, %477 : vector<2x256xf32>
    %c0_85 = arith.constant 0 : index
    %c147 = arith.constant 147 : index
    %480 = vector.load %arg6[%c0_85, %c147] : memref<2x435xf32, #tpu.memory_space<vmem>>, vector<2x256xf32>
    %c34 = arith.constant 34 : index
    %481 = memref.load %arg3[%c34] : memref<98xf32, #tpu.memory_space<smem>>
    %c83_86 = arith.constant 83 : index
    %482 = memref.load %arg3[%c83_86] : memref<98xf32, #tpu.memory_space<smem>>
    %483 = vector.broadcast %481 : f32 to vector<2x256xf32>
    %484 = arith.mulf %483, %480 : vector<2x256xf32>
    %485 = vector.broadcast %482 : f32 to vector<2x256xf32>
    %486 = arith.mulf %485, %480 : vector<2x256xf32>
    %487 = arith.addf %478, %484 : vector<2x256xf32>
    %488 = arith.addf %479, %486 : vector<2x256xf32>
    %c0_87 = arith.constant 0 : index
    %c163 = arith.constant 163 : index
    %489 = vector.load %arg6[%c0_87, %c163] : memref<2x435xf32, #tpu.memory_space<vmem>>, vector<2x256xf32>
    %c41 = arith.constant 41 : index
    %490 = memref.load %arg3[%c41] : memref<98xf32, #tpu.memory_space<smem>>
    %c90 = arith.constant 90 : index
    %491 = memref.load %arg3[%c90] : memref<98xf32, #tpu.memory_space<smem>>
    %492 = vector.broadcast %490 : f32 to vector<2x256xf32>
    %493 = arith.mulf %492, %489 : vector<2x256xf32>
    %494 = vector.broadcast %491 : f32 to vector<2x256xf32>
    %495 = arith.mulf %494, %489 : vector<2x256xf32>
    %496 = arith.addf %487, %493 : vector<2x256xf32>
    %497 = arith.addf %488, %495 : vector<2x256xf32>
    %c0_88 = arith.constant 0 : index
    %c179 = arith.constant 179 : index
    %498 = vector.load %arg6[%c0_88, %c179] : memref<2x435xf32, #tpu.memory_space<vmem>>, vector<2x256xf32>
    %c48 = arith.constant 48 : index
    %499 = memref.load %arg3[%c48] : memref<98xf32, #tpu.memory_space<smem>>
    %c97_89 = arith.constant 97 : index
    %500 = memref.load %arg3[%c97_89] : memref<98xf32, #tpu.memory_space<smem>>
    %501 = vector.broadcast %499 : f32 to vector<2x256xf32>
    %502 = arith.mulf %501, %498 : vector<2x256xf32>
    %503 = vector.broadcast %500 : f32 to vector<2x256xf32>
    %504 = arith.mulf %503, %498 : vector<2x256xf32>
    %505 = arith.addf %496, %502 : vector<2x256xf32>
    %506 = arith.addf %497, %504 : vector<2x256xf32>
    %c13_i32 = arith.constant 13 : i32
    %507 = vector.broadcast %c13_i32 : i32 to vector<1x256xi32>
    %508 = arith.cmpi slt, %15, %507 : vector<1x256xi32>
    %cst_90 = arith.constant 0.000000e+00 : f32
    %509 = vector.shape_cast %508 : vector<1x256xi1> to vector<1x256xi1>
    %510 = vector.broadcast %509 : vector<1x256xi1> to vector<2x256xi1>
    %511 = vector.broadcast %cst_90 : f32 to vector<2x256xf32>
    %512 = arith.select %510, %505, %511 : vector<2x256xi1>, vector<2x256xf32>
    %cst_91 = arith.constant 0.000000e+00 : f32
    %513 = vector.shape_cast %508 : vector<1x256xi1> to vector<1x256xi1>
    %514 = vector.broadcast %513 : vector<1x256xi1> to vector<2x256xi1>
    %515 = vector.broadcast %cst_91 : f32 to vector<2x256xf32>
    %516 = arith.select %514, %506, %515 : vector<2x256xi1>, vector<2x256xf32>
    %517 = arith.addf %444, %512 : vector<2x256xf32>
    %518 = arith.addf %445, %516 : vector<2x256xf32>
    %519 = vector.extract_strided_slice %517 {offsets = [0, 0], sizes = [1, 256], strides = [1, 1]} : vector<2x256xf32> to vector<1x256xf32>
    %520 = vector.extract_strided_slice %518 {offsets = [1, 0], sizes = [1, 256], strides = [1, 1]} : vector<2x256xf32> to vector<1x256xf32>
    %521 = arith.addf %519, %520 : vector<1x256xf32>
    %522 = vector.broadcast %14 : f32 to vector<1x256xf32>
    %523 = arith.addf %521, %522 : vector<1x256xf32>
    %524 = arith.negf %523 : vector<1x256xf32>
    %525 = math.exp %524 : vector<1x256xf32>
    %cst_92 = arith.constant 1.000000e+00 : f32
    %526 = vector.broadcast %cst_92 : f32 to vector<1x256xf32>
    %527 = arith.addf %526, %525 : vector<1x256xf32>
    %528 = arith.divf %526, %527 : vector<1x256xf32>
    %c0_93 = arith.constant 0 : index
    %c0_94 = arith.constant 0 : index
    %c0_95 = arith.constant 0 : index
    %529 = vector.load %arg1[%c0_93, %c0_94, %c0_95] : memref<1x4x256xf32, #tpu.memory_space<vmem>>, vector<1x4x256xf32>
    %530 = vector.shape_cast %529 : vector<1x4x256xf32> to vector<4x256xf32>
    %531 = vector.broadcast %528 : vector<1x256xf32> to vector<4x256xf32>
    %532 = arith.mulf %530, %531 : vector<4x256xf32>
    %c0_96 = arith.constant 0 : index
    %c0_97 = arith.constant 0 : index
    %c0_98 = arith.constant 0 : index
    %533 = vector.load %arg5[%c0_96, %c0_97, %c0_98] : memref<1x4x256xf32, #tpu.memory_space<vmem>>, vector<1x4x256xf32>
    %534 = vector.shape_cast %533 : vector<1x4x256xf32> to vector<4x256xf32>
    %535 = vector.shape_cast %532 : vector<4x256xf32> to vector<1x4x256xf32>
    tpu.vector_store %arg5[%c0_96, %c0_97, %c0_98], %535 {strides = array<i32>} : memref<1x4x256xf32, #tpu.memory_space<vmem>>, vector<1x4x256xf32>,
    return
  }
  func.func @transform_0(%arg0: i32) -> (i32, i32, i32) {
    %c0_i32 = arith.constant 0 : i32
    %c0_i32_0 = arith.constant 0 : i32
    %c0_i32_1 = arith.constant 0 : i32
    return %arg0, %c0_i32, %c0_i32_0 : i32, i32, i32
  }
  func.func @transform_1(%arg0: i32) -> (i32, i32) {
    %c0_i32 = arith.constant 0 : i32
    %c0_i32_0 = arith.constant 0 : i32
    %c0_i32_1 = arith.constant 0 : i32
    return %c0_i32, %c0_i32_0 : i32, i32
  }
  func.func @transform_2(%arg0: i32) -> i32 {
    %c0_i32 = arith.constant 0 : i32
    %c0_i32_0 = arith.constant 0 : i32
    return %c0_i32 : i32
  }
  func.func @transform_3(%arg0: i32) -> i32 {
    %c0_i32 = arith.constant 0 : i32
    %c0_i32_0 = arith.constant 0 : i32
    return %c0_i32 : i32
  }
  func.func @transform_4(%arg0: i32) -> (i32, i32, i32) {
    %c0_i32 = arith.constant 0 : i32
    %c0_i32_0 = arith.constant 0 : i32
    %c0_i32_1 = arith.constant 0 : i32
    return %arg0, %c0_i32, %c0_i32_0 : i32, i32, i32
  }
}

</mosaic_0001>

<bundles_post_ra>
// kernel: tpu_custom_call.1
= control target key start
LH: loop header
LB: loop body
LE: loop exit
PB: predicated region body
PF: predicated region fallthrough
CT: control target
= control target key end

     0   :  { %s3214_s0 = inlined_call_operand.hbm [shape: f32[2,4,256], index: 0, kind: input, shape index: {}]   ;;  %s3215_s1 = inlined_call_operand.vmem [shape: s32[1,256], index: 1, kind: input, shape index: {}]   ;;  %s3216_s2 = inlined_call_operand.vmem [shape: f32[98], index: 2, kind: input, shape index: {}]   ;;  %s3217_s3 = inlined_call_operand.<no memory space> [shape: f32[1], index: 3, kind: input, shape index: {}]   ;;  %s3218_s4 = inlined_call_operand.hbm [shape: f32[2,4,256], index: 4, kind: output, shape index: {}]  }
   0x1   :  { %9 = sst [smem:[#allocation3]] %s3217_s3 }
   0x2   :  { %10 = vsyncpa [#allocation5], 0 }
   0x3   :  { %12 = vsyncpa [#allocation5 + $0x1], 0 }
   0x4   :  { %13 = vsyncpa [#allocation7], 0 }
   0x5   :  { %14 = vsyncpa [#allocation6], 0 }
   0x6   :  { %16 = vsyncpa [#allocation6 + $0x1], 0  ;;  %s2223_s17 = smov 0   ;;  %s2225_s18 = smov 0  }
   0x7   :  { %s2227_s19 = smov 0   ;;  %s2229_s20 = smov 0  }
   0x8 LB: > { %s2244_s3 = sadd.s32 4294967295, %s2174_s20   ;;  %s1859_s21 = sadd.s32 4294967294, %s2174_s20   ;;  %s2174_s20 = sphi %s2229_s20, %s3263_s20   ;;  %s2170_s19 = sphi %s2227_s19, %s3262_s19   ;;  %s2166_s18 = sphi %s2225_s18, %s3261_s18   ;;  %s2162_s17 = sphi %s2223_s17, %s3260_s17  }
   0x9   : > { %p42_p0 = scmp.ne.s32.totalorder %s2166_s18, %s2162_s17  ;;  %p3219_p1 = scmp.eq.s32.totalorder %s2244_s3, 0 }
   0xa   : > { %p135_p3 = scmp.eq.s32.totalorder %s1859_s21, 1  ;;  %p1860_p5 = scmp.ge.s32.totalorder %s2174_s20, 1 }
   0xb   : > { %p2253_p4 = por %p3219_p1, %p42_p0  ;;  %p142_p7 = scmp.lt.s32.totalorder %s2174_s20, 3 }
   0xc   : > { %p2258_p6 = por %p135_p3, %p42_p0  ;;  %s158_s26 = sshll.u32 %s3216_s2, 4  ;;  %s159_s26 = int_to_ptr.vmem [resolvable:$true] %s158_s26 }
   0xd   : > { %s3222_s22 = scalar_select %p2253_p4, 1, 0 }
   0xe   : > { %s3223_s23 = scalar_select %p2258_p6, 1, 0 }
   0xf   : > { %p2266_p8 = pnand %p1860_p5, %p142_p7  ;;  %s2274_s28 = sadd.s32 1, %s2174_s20  }
  0x10   : > { %s26_s30 = ssub.s32 %s2174_s20, %s2274_s28  ;;  %s29_s6 = sadd.s32 1, %s2170_s19 }
  0x11   : > { %p1984_p10 = pneg %p2266_p8  ;;  %p2284_p12 = scmp.eq.s32.totalorder %s26_s30, 0 }
  0x12   : > { %p36_p13 = scmp.ne.s32.totalorder %s2170_s19, %s2166_s18  ;;  %s2059_s7 = scalar_lea.vmem %s159_s26, 16 }
  0x13   : > { %p2278_p11 = pnand %p1984_p10, %p3219_p1  ;;  %p2060_p0 = scmp.ne.s32.totalorder %s159_s26, %s2059_s7 }
  0x14   : > { %p2067_p9 = scmp.lt.s32.totalorder %s159_s26, %s159_s26  ;;  %p2068_p2 = scmp.lt.s32.totalorder %s2059_s7, %s2059_s7 }
  0x15   : > { %p2061_p3 = pneg %p2278_p11 }
  0x16   : > { %p2069_p10 = por %p2068_p2, %p2067_p9 }
  0x17   : > { %p2062_p5 = pnand %p2061_p3, %p2060_p0 }
  0x19   : > { %p2063_p7 = pneg %p2062_p5 }
  0x1b   : > { %p2070_p1 = pnand %p2069_p10, %p2063_p7 }
  0x1d   : > { %2073 = shalt.err (!%p2070_p1)
}
  0x1e   : > { %s2176_s8 = smov [#allocation8]   ;;  %p37_p2 = scmp.eq.s32.totalorder %s2174_s20, 0 }
  0x1f   : > { %1987 = dma.vmem_to_smem (!%p2278_p11), %s159_s26, 16, %s2176_s8, [#allocation7]  }
  0x20   : > { %s2298_s9 = scalar_select %p2284_p12, %s2170_s19, %s29_s6  }
  0x21   : > { %p3227_p1 = scmp.eq.s32.totalorder %s2244_s3, 1  ;;  %p1997_p0 = scmp.lt.s32.totalorder %s2174_s20, 2 }
  0x22   : > { %s172_s11 = sand.u32 1, %s2170_s19   ;;  %p38_p3 = por %p37_p2, %p36_p13 }
  0x23   : > { %p2306_p9 = por %p3227_p1, %p36_p13  ;;  %s1863_s12 = sshll.u32 %s172_s11, 3 }
  0x24   : > { %s1974_s13 = sshll.u32 %s2174_s20, 7  ;;  %s176_s21 = scalar_lea.vmem [#allocation4], %s1863_s12 }
  0x25   : > { %s3228_s10 = scalar_select %p2306_p9, 1, 0 }
  0x26   : > { %s2319_s16 = scalar_lea.hbm %s3214_s0, %s1974_s13  ;;  %s184_s24 = sshll.u32 %s176_s21, 4  ;;  %s2325_s24 = int_to_ptr.vmem [resolvable:$true] %s184_s24 }
  0x27   : > { %p2321_p11 = pnand %p1997_p0, %p38_p3  ;;  %s173_s26 = scalar_lea.sflag [#allocation5], %s172_s11 }
  0x28   : > { %s2074_s29 = scalar_lea.hbm %s2319_s16, 128  ;;  %s2079_s6 = scalar_lea.hbm %s3214_s0, 256 }
  0x29   : > { %p2075_p12 = scmp.ne.s32.totalorder %s2319_s16, %s2074_s29  ;;  %p2076_p13 = pneg %p2321_p11 }
  0x2a   : > { %p2080_p10 = scmp.lt.u32.totalorder %s2319_s16, %s3214_s0  ;;  %p2081_p2 = scmp.lt.u32.totalorder %s2079_s6, %s2074_s29 }
  0x2b   : > { %p2077_p5 = pnand %p2076_p13, %p2075_p12  ;;  %p2083_p0 = scmp.lt.u32.totalorder %s2074_s29, %s2319_s16 }
  0x2c   : > { %p2082_p1 = por %p2081_p2, %p2080_p10 }
  0x2d   : > { %p2078_p7 = pneg %p2077_p5 }
  0x2e   : > { %p2084_p3 = por %p2083_p0, %p2082_p1 }
  0x30   : > { %p2085_p6 = pnand %p2084_p3, %p2078_p7 }
  0x32   : > { %2088 = shalt.err (!%p2085_p6)
}
  0x33   : > { %s2089_s11 = scalar_lea.vmem %s2325_s24, 128  ;;  %s2177_s12 = smov [#allocation4]  }
  0x34   : > { %p2090_p12 = scmp.ne.s32.totalorder %s2325_s24, %s2089_s11  ;;  %s2094_s13 = sshll.u32 %s2177_s12, 4  ;;  %s2095_s13 = int_to_ptr.vmem [resolvable:$false] %s2094_s13 }
  0x35   : > { %s2096_s14 = scalar_lea.vmem %s2095_s13, 256  ;;  %p2097_p4 = scmp.lt.s32.totalorder %s2325_s24, %s2095_s13 }
  0x36   : > { %p2092_p5 = pnand %p2090_p12, %p2076_p13  ;;  %p2098_p10 = scmp.lt.s32.totalorder %s2096_s14, %s2089_s11 }
  0x38   : > { %p2093_p9 = pneg %p2092_p5  ;;  %p2099_p2 = por %p2098_p10, %p2097_p4 }
  0x3a   : > { %p2100_p1 = pnand %p2099_p2, %p2093_p9 }
  0x3c   : > { %2103 = shalt.err (!%p2100_p1)
}
  0x3d   : > { %1991 = dma.hbm_to_vmem [thread:$0]  (!%p2321_p11), %s2319_s16, 128, %s2325_s24, %s173_s26  }
  0x3e   : > { %193 = sbr.rel (%p2266_p8) target bundleno = 605 (0x25d), region = 36  ;;  %s2355_s15 = sand.u32 (!%p2266_p8), 1, %s2166_s18  }
  0x3f   : > { %s1867_s21 = sshll.u32 (!%p2266_p8), %s2355_s15, 3  ;;  %s196_s29 = scalar_lea.sflag (!%p2266_p8), [#allocation5], %s2355_s15 }
  0x40   : > { %s2361_s30 = scalar_lea.vmem (!%p2266_p8), [#allocation4], %s1867_s21  ;;  %p3230_p4 = scmp.ne.s32.totalorder (!%p2266_p8), %s3222_s22, 0 }
  0x45   : > { %2149 = dma.done.wait (%p3230_p4), %s196_s29, 128  }
  0x46   : > { %2151 = vsyncadd (%p3230_p4), %s196_s29, 4294967168  ;;  %p3231_p6 = scmp.eq.s32.totalorder %s2244_s3, 0 }
  0x48   : > { %2153 = dma.done.wait (%p3231_p6), [#allocation7], 16   ;;  %p3232_p8 = pmov %p3231_p6 }
  0x4a   : > { %2155 = vsyncadd (%p3232_p8), [#allocation7], 4294967280 }
  0x4b   : > { %208 = sfence }
  0x4c   : > { %v232_v0 = vld [vmem:[%s2361_s30] sm:$0xff]  ;;  %vm236_vm0 = vcmask 1043456   ;;  %v2178_v1 = vmov 0.0   ;;  %v2179_v13 = vmov 1966171168   ;;  %v273_v15 = vlaneseq  ;;  %s1873_s22 = sld [smem:[#allocation8 + $0xe]] }
  0x4d   : > { %229 = vst [vmem:[#allocation2] sm:$0x3] %v2178_v1  ;;  %v234_v2 = vcombine.high %v232_v0, %v232_v0  ;;  %v237_v3 = vsel %vm236_vm0, %v232_v0, -inf  ;;  %v251_v4 = vsel %vm236_vm0, %v232_v0, 0.0  ;;  %v271_v14 = vunpack.c.l.s4 %v2179_v13  ;;  %s1871_s27 = sld [smem:[#allocation8 + $0x7]]  ;;  %s1872_s24 = sld [smem:[#allocation8 + $0x38]] }
  0x4e   : > { %v238_v5 = vrot.slane %v237_v3, 4  ;;  %v252_v6 = vrot.slane %v251_v4, 4  ;;  %vm230_vm1 = vcmask 410624   ;;  %v2372_v25 = vshrl.u32 %v273_v15, 7  ;;  %s1874_s16 = sld [smem:[#allocation8 + $0x3f]]  ;;  %s1876_s25 = sld [smem:[#allocation8 + $0x46]] }
  0x4f   : > { %v244_v7 = vsel %vm236_vm0, %v234_v2, -inf  ;;  %v258_v8 = vsel %vm236_vm0, %v234_v2, 0.0  ;;  %231 = vst.msk [vmem:[#allocation2 + $0x6] sm:$0x3] %vm230_vm1, %v2178_v1  ;;  %v272_v24 = vunpack.c.0.s8 %v271_v14  ;;  %vm287_vm2 = vcmp.lt.s32.totalorder %v273_v15, 256  ;;  %s1875_s26 = sld [smem:[#allocation8 + $0x15]] }
  0x50   : > { %v239_v9 = vmax.f32 %v237_v3, %v238_v5  ;;  %v245_v10 = vrot.slane %v244_v7, 4  ;;  %v253_v11 = vadd.f32 %v252_v6, %v251_v4  ;;  %v259_v12 = vrot.slane %v258_v8, 4  ;;  %s1878_s5 = sld [smem:[#allocation8 + $0x4d]]  ;;  %s1877_s6 = sld [smem:[#allocation8 + $0x1c]] }
  0x51   : > { %v275_v37 = vsub.s32 %v272_v24, %v2372_v25  ;;  %s2180_s7 = smov 96   ;;  %s2181_s8 = smov 112   ;;  %vm330_vm3 = vcmask 916480   ;;  %vm351_vm4 = vcmask 785408   ;;  %vm372_vm5 = vcmask 654336  }
  0x52   : > { %v240_v16 = vrot.slane %v239_v9, 2  ;;  %v246_v17 = vmax.f32 %v244_v7, %v245_v10  ;;  %v254_v18 = vrot.slane %v253_v11, 2  ;;  %v260_v19 = vadd.f32 %v259_v12, %v258_v8  ;;  %s1880_s11 = sld [smem:[#allocation8 + $0x54]]  ;;  %s1879_s12 = sld [smem:[#allocation8 + $0x23]] }
  0x53   : > { %v343_v45 = vstv %s1873_s22  ;;  %v322_v46 = vstv %s1871_s27  ;;  %v324_v49 = vstv %s1872_s24  ;;  %s1882_s13 = sld [smem:[#allocation8 + $0x5b]]  ;;  %s1881_s14 = sld [smem:[#allocation8 + $0x2a]]  ;;  %vm394_vm6 = vcmask 523264  }
  0x54   : > { %v241_v20 = vmax.f32 %v239_v9, %v240_v16  ;;  %v247_v21 = vrot.slane %v246_v17, 2  ;;  %v255_v22 = vadd.f32 %v254_v18, %v253_v11  ;;  %v261_v23 = vrot.slane %v260_v19, 2  ;;  %s2182_s29 = smov 80   ;;  %s1886_s22 = sld [smem:[#allocation8 + $0x39]] }
  0x55   : > { %v345_v48 = vstv %s1874_s16  ;;  %v366_v54 = vstv %s1876_s25  ;;  %v364_v55 = vstv %s1875_s26  ;;  %s1885_s27 = sld [smem:[#allocation8 + $0x8]]  ;;  %s2183_s16 = smov 64   ;;  %vm415_vm7 = vcmask 392192  }
  0x56   : > { %v242_v26 = vrot.slane %v241_v20, 1  ;;  %v248_v27 = vmax.f32 %v246_v17, %v247_v21  ;;  %v256_v28 = vrot.slane %v255_v22, 1  ;;  %v262_v29 = vadd.f32 %v261_v23, %v260_v19  ;;  %s1888_s24 = sld [smem:[#allocation8 + $0x40]]  ;;  %s1887_s25 = sld [smem:[#allocation8 + $0xf]] }
  0x57   : > { %v388_v59 = vstv %s1878_s5  ;;  %v386_v60 = vstv %s1877_s6  ;;  %s2184_s26 = smov 48   ;;  %s1890_s5 = sld [smem:[#allocation8 + $0x47]]  ;;  %vm436_vm8 = vcmask 261120   ;;  %vm482_vm11 = vcmask 416768  }
  0x58   : > { %v243_v30 = vmax.f32 %v241_v20, %v242_v26  ;;  %v249_v31 = vrot.slane %v248_v27, 1  ;;  %v257_v32 = vadd.f32 %v256_v28, %v255_v22  ;;  %v263_v33 = vrot.slane %v262_v29, 1  ;;  %s1889_s6 = sld [smem:[#allocation8 + $0x16]]  ;;  %p3257_p11 = scmp.ne.s32.totalorder %s3228_s10, 0 }
  0x59   : > { %v409_v63 = vstv %s1880_s11  ;;  %v407_v0 = vstv %s1879_s12  ;;  %v430_v3 = vstv %s1882_s13  ;;  %v428_v4 = vstv %s1881_s14  ;;  %s2185_s11 = smov 32   ;;  %s1892_s12 = sld [smem:[#allocation8 + $0x4e]] }
  0x5a   : > { %v250_v34 = vmax.f32 %v248_v27, %v249_v31  ;;  %v264_v35 = vadd.f32 %v263_v33, %v262_v29  ;;  %v265_v36 = vmul.f32 0.25, %v257_v32  ;;  %v533_v8 = vstv %s1886_s22  ;;  %s1891_s13 = sld [smem:[#allocation8 + $0x1d]]  ;;  %s1893_s22 = sld [smem:[#allocation8 + $0x24]] }
  0x5b   : > { %v531_v9 = vstv %s1885_s27  ;;  %s1894_s14 = sld [smem:[#allocation8 + $0x55]]  ;;  %s1896_s27 = sld [smem:[#allocation8 + $0x5c]]  ;;  %vm685_vm12 = vcmask 408576  }
  0x5c   : > { %v266_v38 = vmul.f32 0.25, %v264_v35  ;;  %v269_v39 = vcombine.low %v243_v30, %v250_v34  ;;  %v553_v12 = vstv %s1888_s24  ;;  %v551_v13 = vstv %s1887_s25  ;;  %s1895_s24 = sld [smem:[#allocation8 + $0x2b]]  ;;  %s1900_s25 = sld [smem:[#allocation8 + $0x3a]] }
  0x5d   : > { %v573_v16 = vstv %s1890_s5  ;;  %s1899_s5 = sld [smem:[#allocation8 + $0x9]] }
  0x5e   : > { %v276_v40 = vrot.slane %v269_v39, %v275_v37  ;;  %v293_v41 = vcombine.low %v265_v36, %v266_v38  ;;  %v571_v17 = vstv %s1889_s6  ;;  %s1902_s6 = sld [smem:[#allocation8 + $0x41]] }
  0x5f   : > { %v594_v21 = vstv %s1892_s12  ;;  %s1914_s12 = sld [smem:[#allocation8 + $0x3b]] }
  0x60   : > { %v283_v42 = vrot.slane %v276_v40, %v275_v37  ;;  %v300_v43 = vrot.slane %v293_v41, %v275_v37  ;;  %v592_v22 = vstv %s1891_s13  ;;  %v612_v27 = vstv %s1893_s22  ;;  %s1901_s13 = sld [smem:[#allocation8 + $0x10]]  ;;  %s1928_s22 = sld [smem:[#allocation8 + $0x3c]] }
  0x61   : > { %v614_v26 = vstv %s1894_s14  ;;  %v634_v30 = vstv %s1896_s27  ;;  %s1904_s14 = sld [smem:[#allocation8 + $0x48]]  ;;  %s1913_s27 = sld [smem:[#allocation8 + $0xa]] }
  0x62   : > { %290 = vst.msk [vmem:[#allocation2 + $0x2] ss:$2 sm:$0x3] %vm287_vm2, %v283_v42  ;;  %v307_v44 = vrot.slane %v300_v43, %v275_v37  ;;  %v632_v31 = vstv %s1895_s24  ;;  %v736_v35 = vstv %s1900_s25  ;;  %s1916_s24 = sld [smem:[#allocation8 + $0x42]]  ;;  %s1903_s25 = sld [smem:[#allocation8 + $0x17]] }
  0x63   : > { %v734_v36 = vstv %s1899_s5  ;;  %s1906_s5 = sld [smem:[#allocation8 + $0x4f]] }
  0x64   : > { %310 = vst.msk [vmem:[#allocation2 + $0x3] ss:$2 sm:$0x3] %vm287_vm2, %v307_v44  ;;  %v756_v39 = vstv %s1902_s6  ;;  %s1927_s6 = sld [smem:[#allocation8 + $0xb]] }
  0x65   : > { %v939_v41 = vstv %s1914_s12  ;;  %s1930_s12 = sld [smem:[#allocation8 + $0x43]] }
  0x66   : > { %v754_v44 = vstv %s1901_s13  ;;  %s1942_s13 = sld [smem:[#allocation8 + $0x3d]] }
  0x6b   : > { %v2375_v47 = vld [vmem:[#allocation2] sm:$0x3f] }
  0x6c   : > { %v344_v50 = vmul.f32 %v343_v45, %v2375_v47  ;;  %v323_v51 = vmul.f32 %v322_v46, %v2375_v47  ;;  %v346_v52 = vmul.f32 %v345_v48, %v2375_v47  ;;  %v325_v53 = vmul.f32 %v324_v49, %v2375_v47  ;;  %v383_v58 = vld [vmem:[#allocation2 + $0x2] sm:$0x3f] }
  0x6d   : > { %v367_v56 = vmul.f32 %v366_v54, %v2375_v47  ;;  %v365_v57 = vmul.f32 %v364_v55, %v2375_v47  ;;  %v389_v61 = vmul.f32 %v388_v59, %v383_v58  ;;  %v387_v62 = vmul.f32 %v386_v60, %v383_v58  ;;  %v2393_v7 = vld [vmem:[#allocation2] sm:$0x3f] }
  0x6e   : > { %348 = vrot.lane.b32.xlu1 %v344_v50, %s2180_s7  ;;  %327 = vrot.lane.b32.xlu0 %v323_v51, %s2181_s8  ;;  %v410_v1 = vmul.f32 %v409_v63, %v383_v58  ;;  %v408_v2 = vmul.f32 %v407_v0, %v383_v58  ;;  %v431_v5 = vmul.f32 %v430_v3, %v383_v58  ;;  %v589_v20 = vld [vmem:[#allocation2 + $0x2] sm:$0x3f]  ;;  %v776_v45 = vstv %s1904_s14  ;;  %s1915_s14 = sld [smem:[#allocation8 + $0x11]] }
  0x6f   : > { %v429_v6 = vmul.f32 %v428_v4, %v383_v58  ;;  %v534_v10 = vmul.f32 %v533_v8, %v2393_v7  ;;  %v532_v11 = vmul.f32 %v531_v9, %v2393_v7  ;;  %v554_v14 = vmul.f32 %v553_v12, %v2393_v7  ;;  %v2413_v34 = vld [vmem:[#allocation2] sm:$0x3f] }
  0x70   : > { %v552_v15 = vmul.f32 %v551_v13, %v2393_v7  ;;  %v574_v18 = vmul.f32 %v573_v16, %v2393_v7  ;;  %v572_v19 = vmul.f32 %v571_v17, %v2393_v7  ;;  %v595_v23 = vmul.f32 %v594_v21, %v589_v20  ;;  %v2419_v40 = vld [vmem:[#allocation2] sm:$0x3f] }
  0x71   : > { %v593_v24 = vmul.f32 %v592_v22, %v589_v20  ;;  %v615_v28 = vmul.f32 %v614_v26, %v589_v20  ;;  %v613_v29 = vmul.f32 %v612_v27, %v589_v20  ;;  %v635_v32 = vmul.f32 %v634_v30, %v589_v20  ;;  %v2429_v49 = vld [vmem:[#allocation2] sm:$0x3f] }
  0x72   : > { %356 = vrot.lane.b32.xlu1 %v346_v52, %s2180_s7  ;;  %335 = vrot.lane.b32.xlu0 %v325_v53, %s2181_s8  ;;  %v633_v33 = vmul.f32 %v632_v31, %v589_v20  ;;  %v737_v37 = vmul.f32 %v736_v35, %v2413_v34  ;;  %v735_v38 = vmul.f32 %v734_v36, %v2413_v34  ;;  %v1126_v50 = vstv %s1928_s22  ;;  %v2439_v58 = vld [vmem:[#allocation2 + $0x2] sm:$0x3f]  ;;  %s1918_s22 = sld [smem:[#allocation8 + $0x49]] }
  0x73   : > { %v757_v42 = vmul.f32 %v756_v39, %v2413_v34  ;;  %v940_v43 = vmul.f32 %v939_v41, %v2419_v40  ;;  %v755_v46 = vmul.f32 %v754_v44, %v2413_v34  ;;  %v777_v48 = vmul.f32 %v776_v45, %v2413_v34  ;;  %v2445_v0 = vld [vmem:[#allocation2] sm:$0x3f] }
  0x74   : > { %v937_v51 = vstv %s1913_s27  ;;  %v1127_v52 = vmul.f32 %v1126_v50, %v2429_v49  ;;  %v959_v54 = vstv %s1916_s24  ;;  %v774_v55 = vstv %s1903_s25  ;;  %s1905_s27 = sld [smem:[#allocation8 + $0x1e]]  ;;  %s1929_s25 = sld [smem:[#allocation8 + $0x12]]  ;;  %v2487_v44 = vld [vmem:[#allocation2 + $0x2] sm:$0x3f] }
  0x75   : > { %v938_v53 = vmul.f32 %v937_v51, %v2419_v40  ;;  %v797_v59 = vstv %s1906_s5  ;;  %v1124_v60 = vstv %s1927_s6  ;;  %v1146_v63 = vstv %s1930_s12  ;;  %s1908_s24 = sld [smem:[#allocation8 + $0x56]]  ;;  %s1932_s5 = sld [smem:[#allocation8 + $0x4a]] }
  0x76   : > { %377 = vrot.lane.b32.xlu1 %v367_v56, %s2182_s29  ;;  %369 = vrot.lane.b32.xlu0 %v365_v57, %s2182_s29  ;;  %v960_v56 = vmul.f32 %v959_v54, %v2419_v40  ;;  %v775_v57 = vmul.f32 %v774_v55, %v2413_v34  ;;  %v957_v4 = vstv %s1915_s14  ;;  %s1941_s6 = sld [smem:[#allocation8 + $0xc]]  ;;  %s1917_s14 = sld [smem:[#allocation8 + $0x18]] }
  0x77   : > { %v958_v8 = vmul.f32 %v957_v4, %v2419_v40  ;;  %s1944_s12 = sld [smem:[#allocation8 + $0x44]] }
  0x7a   : > { %399 = vrot.lane.b32.xlu1 %v389_v61, %s2183_s16  ;;  %391 = vrot.lane.b32.xlu0 %v387_v62, %s2183_s16  ;;  %v798_v61 = vmul.f32 %v797_v59, %v2439_v58  ;;  %v1125_v62 = vmul.f32 %v1124_v60, %v2429_v49 }
  0x7b   : > { %v1167_v16 = vstv %s1932_s5  ;;  %s1934_s5 = sld [smem:[#allocation8 + $0x51]] }
  0x7c   : > { %v978_v26 = vstv %s1917_s14  ;;  %s1958_s14 = sld [smem:[#allocation8 + $0x45]] }
  0x7d   : > { %v1349_v20 = vstv %s1944_s12  ;;  %s1946_s12 = sld [smem:[#allocation8 + $0x4b]] }
  0x7e   : > { %420 = vrot.lane.b32.xlu1 %v410_v1, %s2184_s26  ;;  %412 = vrot.lane.b32.xlu0 %v408_v2, %s2184_s26  ;;  %v1329_v1 = vstv %s1942_s13  ;;  %v1147_v2 = vmul.f32 %v1146_v63, %v2429_v49  ;;  %s1956_s13 = sld [smem:[#allocation8 + $0x3e]]  ;;  %v1350_v22 = vmul.f32 %v1349_v20, %v2445_v0 }
  0x7f   : > { %v1330_v3 = vmul.f32 %v1329_v1, %v2445_v0 }
  0x81   : > { %v1187_v39 = vstv %s1934_s5  ;;  %s1936_s5 = sld [smem:[#allocation8 + $0x58]] }
  0x82   : > { %441 = vrot.lane.b32.xlu1 %v431_v5, %s2185_s11  ;;  %433 = vrot.lane.b32.xlu0 %v429_v6, %s2185_s11  ;;  %v975_v5 = vld [vmem:[#allocation2 + $0x2] sm:$0xf]  ;;  %v980_v6 = vstv %s1918_s22  ;;  %s1920_s22 = sld [smem:[#allocation8 + $0x50]]  ;;  %v1552_v51 = vstv %s1958_s14  ;;  %s2507_s14 = sld [smem:[#allocation8 + $0x26]] }
  0x83   : > { %v981_v9 = vmul.f32 %v980_v6, %v975_v5  ;;  %v1370_v45 = vstv %s1946_s12  ;;  %s1948_s12 = sld [smem:[#allocation8 + $0x52]] }
  0x86   : > { %543 = vrot.lane.b32.xlu1 %v534_v10, %s2181_s8  ;;  %536 = vrot.lane.b32.xlu0 %v532_v11, %s2181_s8  ;;  %v795_v10 = vstv %s1905_s27  ;;  %v817_v11 = vstv %s1908_s24  ;;  %s1907_s27 = sld [smem:[#allocation8 + $0x25]] }
  0x87   : > { %v796_v12 = vmul.f32 %v795_v10, %v2439_v58  ;;  %v818_v13 = vmul.f32 %v817_v11, %v2439_v58  ;;  %s1910_s24 = sld [smem:[#allocation8 + $0x5d]]  ;;  %v2521_v10 = vld [vmem:[#allocation2 + $0x2] sm:$0x3f] }
  0x88   : > { %v1001_v30 = vstv %s1920_s22  ;;  %s1919_s22 = sld [smem:[#allocation8 + $0x1f]] }
  0x89   : > { %v1390_v4 = vstv %s1948_s12  ;;  %s2537_s12 = sld [smem:[#allocation8 + $0x59]] }
  0x8a   : > { %563 = vrot.lane.b32.xlu1 %v554_v14, %s2180_s7  ;;  %556 = vrot.lane.b32.xlu0 %v552_v15, %s2180_s7  ;;  %v1144_v14 = vstv %s1929_s25  ;;  %v2458_v15 = vld [vmem:[#allocation2 + $0x2] sm:$0x3f]  ;;  %s1931_s25 = sld [smem:[#allocation8 + $0x19]] }
  0x8b   : > { %v1145_v17 = vmul.f32 %v1144_v14, %v2429_v49 }
  0x8c   : > { %v815_v31 = vstv %s1907_s27  ;;  %s1922_s27 = sld [smem:[#allocation8 + $0x57]] }
  0x8d   : > { %v837_v35 = vstv %s1910_s24  ;;  %s1909_s24 = sld [smem:[#allocation8 + $0x2c]] }
  0x8e   : > { %583 = vrot.lane.b32.xlu1 %v574_v18, %s2182_s29  ;;  %576 = vrot.lane.b32.xlu0 %v572_v19, %s2182_s29  ;;  %v1168_v18 = vmul.f32 %v1167_v16, %v2458_v15  ;;  %v1327_v19 = vstv %s1941_s6  ;;  %s1943_s6 = sld [smem:[#allocation8 + $0x13]] }
  0x8f   : > { %v1328_v21 = vmul.f32 %v1327_v19, %v2445_v0 }
  0x90   : > { %v1165_v36 = vstv %s1931_s25  ;;  %s1933_s25 = sld [smem:[#allocation8 + $0x20]] }
  0x92   : > { %604 = vrot.lane.b32.xlu1 %v595_v23, %s2183_s16  ;;  %597 = vrot.lane.b32.xlu0 %v593_v24, %s2183_s16  ;;  %v2468_v23 = vld [vmem:[#allocation2] sm:$0x3f]  ;;  %v1532_v24 = vstv %s1956_s13  ;;  %s1955_s13 = sld [smem:[#allocation8 + $0xd]]  ;;  %v1021_v55 = vstv %s1922_s27  ;;  %s2513_s27 = sld [smem:[#allocation8]] }
  0x93   : > { %v1533_v27 = vmul.f32 %v1532_v24, %v2468_v23 }
  0x94   : > { %v1347_v41 = vstv %s1943_s6  ;;  %s1945_s6 = sld [smem:[#allocation8 + $0x1a]] }
  0x96   : > { %624 = vrot.lane.b32.xlu1 %v615_v28, %s2184_s26  ;;  %617 = vrot.lane.b32.xlu0 %v613_v29, %s2184_s26  ;;  %v979_v28 = vmul.f32 %v978_v26, %v975_v5  ;;  %v2473_v29 = vld [vmem:[#allocation2 + $0x2] sm:$0x3f]  ;;  %v1185_v60 = vstv %s1933_s25  ;;  %s2523_s25 = sld [smem:[#allocation8 + $0x27]] }
  0x97   : > { %v1186_v1 = vmul.f32 %v1185_v60, %v2458_v15 }
  0x9a   : > { %644 = vrot.lane.b32.xlu1 %v635_v32, %s2185_s11  ;;  %637 = vrot.lane.b32.xlu0 %v633_v33, %s2185_s11  ;;  %v1002_v32 = vmul.f32 %v1001_v30, %v2473_v29  ;;  %v816_v33 = vmul.f32 %v815_v31, %v2439_v58 }
  0x9c   : > { %v1205_v30 = vstv %s2523_s25  ;;  %s2650_s25 = sld [smem:[#allocation8 + $0x22]] }
  0x9e   : > { %746 = vrot.lane.b32.xlu1 %v737_v37, %s2181_s8  ;;  %739 = vrot.lane.b32.xlu0 %v735_v38, %s2181_s8  ;;  %v838_v37 = vmul.f32 %v837_v35, %v2439_v58  ;;  %v1166_v38 = vmul.f32 %v1165_v36, %v2458_v15 }
  0xa2   : > { %766 = vrot.lane.b32.xlu1 %v757_v42, %s2180_s7  ;;  %949 = vrot.lane.b32.xlu0 %v940_v43, %s2181_s8  ;;  %v1188_v42 = vmul.f32 %v1187_v39, %v2458_v15  ;;  %v1348_v43 = vmul.f32 %v1347_v41, %v2445_v0  ;;  %v1206_v39 = vmul.f32 %v1205_v30, %v2458_v15 }
  0xa6   : > { %759 = vrot.lane.b32.xlu1 %v755_v46, %s2180_s7  ;;  %786 = vrot.lane.b32.xlu0 %v777_v48, %s2182_s29  ;;  %v1530_v46 = vstv %s1955_s13  ;;  %v1371_v48 = vmul.f32 %v1370_v45, %v2487_v44  ;;  %s1957_s13 = sld [smem:[#allocation8 + $0x14]] }
  0xa7   : > { %v1531_v50 = vmul.f32 %v1530_v46, %v2468_v23 }
  0xaa   : > { %1136 = vrot.lane.b32.xlu1 %v1127_v52, %s2181_s8  ;;  %942 = vrot.lane.b32.xlu0 %v938_v53, %s2181_s8  ;;  %v999_v52 = vstv %s1919_s22  ;;  %v1553_v53 = vmul.f32 %v1552_v51, %v2468_v23  ;;  %s2509_s22 = sld [smem:[#allocation8 + $0x5e]] }
  0xab   : > { %v1000_v54 = vmul.f32 %v999_v52, %v2473_v29 }
  0xae   : > { %969 = vrot.lane.b32.xlu1 %v960_v56, %s2180_s7  ;;  %779 = vrot.lane.b32.xlu0 %v775_v57, %s2182_s29  ;;  %v835_v56 = vstv %s1909_s24  ;;  %v1022_v57 = vmul.f32 %v1021_v55, %v2473_v29  ;;  %s2515_s24 = sld [smem:[#allocation8 + $0x31]] }
  0xaf   : > { %v836_v59 = vmul.f32 %v835_v56, %v2439_v58 }
  0xb2   : > { %807 = vrot.lane.b32.xlu1 %v798_v61, %s2183_s16  ;;  %1129 = vrot.lane.b32.xlu0 %v1125_v62, %s2181_s8  ;;  %v1207_v61 = vstv %s1936_s5  ;;  %s2525_s5 = sld [smem:[#allocation8 + $0x5f]] }
  0xb6   : > { %1156 = vrot.lane.b32.xlu1 %v1147_v2, %s2180_s7  ;;  %1339 = vrot.lane.b32.xlu0 %v1330_v3, %s2181_s8  ;;  %v1208_v2 = vmul.f32 %v1207_v61, %v2458_v15  ;;  %v1368_v3 = vstv %s1945_s6  ;;  %s2533_s6 = sld [smem:[#allocation8 + $0x21]] }
  0xb7   : > { %v1369_v6 = vmul.f32 %v1368_v3, %v2487_v44 }
  0xb8   : > { %v1227_v31 = vstv %s2525_s5  ;;  %s2656_s5 = sld [smem:[#allocation8 + $0x2f]] }
  0xb9   : > { %v1228_v41 = vmul.f32 %v1227_v31, %v2458_v15 }
  0xba   : > { %962 = vrot.lane.b32.xlu1 %v958_v8, %s2180_s7  ;;  %990 = vrot.lane.b32.xlu0 %v981_v9, %s2182_s29  ;;  %v1391_v8 = vmul.f32 %v1390_v4, %v2487_v44  ;;  %v1550_v9 = vstv %s1957_s13  ;;  %s2546_s13 = sld [smem:[#allocation8 + $0x1b]] }
  0xbb   : > { %v1551_v14 = vmul.f32 %v1550_v9, %v2468_v23 }
  0xbe   : > { %800 = vrot.lane.b32.xlu1 %v796_v12, %s2183_s16  ;;  %827 = vrot.lane.b32.xlu0 %v818_v13, %s2184_s26 }
  0xc2   : > { %1149 = vrot.lane.b32.xlu1 %v1145_v17, %s2180_s7  ;;  %1177 = vrot.lane.b32.xlu0 %v1168_v18, %s2182_s29  ;;  %v1019_v17 = vstv %s2507_s14  ;;  %v1041_v18 = vstv %s2509_s22  ;;  %s2569_s14 = sld [smem:[#allocation8 + $0x2e]]  ;;  %s2585_s22 = sld [smem:[#allocation8 + $0x1]] }
  0xc3   : > { %v1020_v24 = vmul.f32 %v1019_v17, %v2473_v29  ;;  %v1042_v26 = vmul.f32 %v1041_v18, %v2473_v29 }
  0xc6   : > { %1332 = vrot.lane.b32.xlu1 %v1328_v21, %s2181_s8  ;;  %1359 = vrot.lane.b32.xlu0 %v1350_v22, %s2180_s7  ;;  %v316_v21 = vstv %s2513_s27  ;;  %s2587_s27 = sld [smem:[#allocation8 + $0x28]] }
  0xca   : > { %1542 = vrot.lane.b32.xlu1 %v1533_v27, %s2181_s8  ;;  %983 = vrot.lane.b32.xlu0 %v979_v28, %s2182_s29  ;;  %v318_v27 = vstv %s2515_s24  ;;  %s2609_s24 = sld [smem:[#allocation8 + $0x32]] }
  0xce   : > { %1011 = vrot.lane.b32.xlu1 %v1002_v32, %s2183_s16  ;;  %820 = vrot.lane.b32.xlu0 %v816_v33, %s2184_s26  ;;  %v317_v32 = vmul.f32 %v316_v21, %v2375_v47 }
  0xd2   : > { %847 = vrot.lane.b32.xlu1 %v838_v37, %s2185_s11  ;;  %1170 = vrot.lane.b32.xlu0 %v1166_v38, %s2182_s29  ;;  %v319_v38 = vmul.f32 %v318_v27, %v2375_v47 }
  0xd6   : > { %1197 = vrot.lane.b32.xlu1 %v1188_v42, %s2183_s16  ;;  %1352 = vrot.lane.b32.xlu0 %v1348_v43, %s2180_s7  ;;  %v1388_v42 = vstv %s2533_s6  ;;  %s2664_s6 = sld [smem:[#allocation8 + $0x35]] }
  0xda   : > { %1380 = vrot.lane.b32.xlu1 %v1371_v48, %s2182_s29  ;;  %1535 = vrot.lane.b32.xlu0 %v1531_v50, %s2181_s8  ;;  %s1960_s8 = sld [smem:[#allocation8 + $0x4c]]  ;;  %v1410_v48 = vstv %s2537_s12  ;;  %s2666_s12 = sld [smem:[#allocation8 + $0x3]] }
  0xdb   : > { %v1411_v56 = vmul.f32 %v1410_v48, %v2487_v44 }
  0xde   : > { %1562 = vrot.lane.b32.xlu1 %v1553_v53, %s2180_s7  ;;  %1004 = vrot.lane.b32.xlu0 %v1000_v54, %s2183_s16  ;;  %v1389_v54 = vmul.f32 %v1388_v42, %v2487_v44 }
  0xe0   : > { %v2501_v62 = vpop.permute.xlu1 %348  ;;  %v328_v63 = vpop.permute.xlu0 %327  ;;  %v1573_v11 = vstv %s1960_s8  ;;  %s2548_s8 = sld [smem:[#allocation8 + $0x53]] }
  0xe1   : > { %v1574_v16 = vmul.f32 %v1573_v11, %v2521_v10  ;;  %v329_v22 = vrot.slane %v328_v63, 2  ;;  %v350_v36 = vrot.slane %v2501_v62, 2 }
  0xe2   : > { %1031 = vrot.lane.b32.xlu1 %v1022_v57, %s2184_s26  ;;  %840 = vrot.lane.b32.xlu0 %v836_v59, %s2185_s11  ;;  %v1571_v57 = vstv %s2546_s13  ;;  %s2673_s13 = sld [smem:[#allocation8 + $0x61]] }
  0xe3   : > { %v331_v37 = vsel %vm330_vm3, %v328_v63, %v329_v22  ;;  %v352_v52 = vsel %vm351_vm4, %v2501_v62, %v350_v36  ;;  %v1572_v9 = vmul.f32 %v1571_v57, %v2521_v10 }
  0xe4   : > { %v2511_v58 = vpop.permute.xlu1 %356  ;;  %v336_v5 = vpop.permute.xlu0 %335  ;;  %v333_v47 = vadd.f32 %v331_v37, %v317_v32 }
  0xe5   : > { %v337_v28 = vrot.slane %v336_v5, 2  ;;  %v358_v43 = vrot.slane %v2511_v58, 2 }
  0xe6   : > { %1190 = vrot.lane.b32.xlu1 %v1186_v1, %s2183_s16  ;;  %1217 = vrot.lane.b32.xlu0 %v1208_v2, %s2184_s26  ;;  %v1593_v59 = vstv %s2548_s8  ;;  %v2186_v1 = vmov 1983009808   ;;  %v354_v3 = vadd.f32 %v352_v52, %v333_v47  ;;  %s2188_s8 = smov 50  }
  0xe7   : > { %v338_v45 = vsel %vm330_vm3, %v336_v5, %v337_v28  ;;  %v359_v60 = vsel %vm351_vm4, %v2511_v58, %v358_v43  ;;  %v462_v2 = vunpack.c.l.s4 %v2186_v1 }
  0xe8   : > { %v2527_v12 = vpop.permute.xlu1 %377  ;;  %v370_v13 = vpop.permute.xlu0 %369  ;;  %v340_v55 = vadd.f32 %v338_v45, %v319_v38 }
  0xe9   : > { %v371_v46 = vrot.slane %v370_v13, 2  ;;  %v379_v61 = vrot.slane %v2527_v12, 2  ;;  %v463_v22 = vunpack.c.0.s8 %v462_v2 }
  0xea   : > { %1373 = vrot.lane.b32.xlu1 %v1369_v6, %s2182_s29  ;;  %1400 = vrot.lane.b32.xlu0 %v1391_v8, %s2183_s16  ;;  %v361_v11 = vadd.f32 %v359_v60, %v340_v55 }
  0xeb   : > { %v373_v62 = vsel %vm372_vm5, %v370_v13, %v371_v46  ;;  %v380_v17 = vsel %vm372_vm5, %v2527_v12, %v379_v61 }
  0xec   : > { %v2539_v19 = vpop.permute.xlu1 %399  ;;  %v392_v20 = vpop.permute.xlu0 %391  ;;  %v375_v13 = vadd.f32 %v373_v62, %v354_v3  ;;  %v382_v32 = vadd.f32 %v380_v17, %v361_v11 }
  0xed   : > { %v393_v53 = vrot.slane %v392_v20, 6  ;;  %v401_v58 = vrot.slane %v2539_v19, 6 }
  0xee   : > { %1555 = vrot.lane.b32.xlu1 %v1551_v14, %s2180_s7  ;;  %1583 = vrot.lane.b32.xlu0 %v1574_v16, %s2182_s29  ;;  %s2564_s7 = sld [smem:[#allocation8 + $0x2d]]  ;;  %v1594_v14 = vmul.f32 %v1593_v59, %v2521_v10 }
  0xef   : > { %v395_v6 = vsel %vm394_vm6, %v393_v53, %v392_v20  ;;  %v1225_v20 = vstv %s2569_s14  ;;  %v402_v28 = vsel %vm394_vm6, %v401_v58, %v2539_v19  ;;  %v525_v19 = vstv %s2585_s22  ;;  %s2695_s14 = sld [smem:[#allocation8 + $0x4]]  ;;  %s2697_s22 = sld [smem:[#allocation8 + $0x5a]] }
  0xf0   : > { %v2554_v33 = vpop.permute.xlu1 %420  ;;  %v413_v35 = vpop.permute.xlu0 %412  ;;  %v1226_v36 = vmul.f32 %v1225_v20, %v2458_v15  ;;  %v404_v42 = vadd.f32 %v402_v28, %v382_v32  ;;  %v526_v47 = vmul.f32 %v525_v19, %v2393_v7  ;;  %v1591_v19 = vstv %s2650_s25  ;;  %s1897_s25 = sld [smem:[#allocation8 + $0x2]] }
  0xf1   : > { %v414_v63 = vrot.slane %v413_v35, 6  ;;  %v422_v18 = vrot.slane %v2554_v33, 6 }
  0xf2   : > { %1024 = vrot.lane.b32.xlu1 %v1020_v24, %s2184_s26  ;;  %1051 = vrot.lane.b32.xlu0 %v1042_v26, %s2185_s11  ;;  %v397_v24 = vadd.f32 %v395_v6, %v375_v13 }
  0xf3   : > { %v416_v21 = vsel %vm415_vm7, %v414_v63, %v413_v35  ;;  %v423_v37 = vsel %vm415_vm7, %v422_v18, %v2554_v33 }
  0xf4   : > { %v2571_v50 = vpop.permute.xlu1 %441  ;;  %v434_v51 = vpop.permute.xlu0 %433  ;;  %v1039_v16 = vstv %s2564_s7  ;;  %v418_v35 = vadd.f32 %v416_v21, %v397_v24  ;;  %v425_v15 = vadd.f32 %v423_v37, %v404_v42  ;;  %s2681_s7 = sld [smem:[#allocation8 + $0x60]] }
  0xf5   : > { %v435_v8 = vrot.slane %v434_v51, 6  ;;  %v443_v30 = vrot.slane %v2571_v50, 6  ;;  %v1040_v12 = vmul.f32 %v1039_v16, %v2473_v29 }
  0xf6   : > { %1210 = vrot.lane.b32.xlu1 %v1206_v39, %s2184_s26  ;;  %1237 = vrot.lane.b32.xlu0 %v1228_v41, %s2185_s11  ;;  %v1408_v39 = vstv %s2587_s27  ;;  %v2620_v41 = vsub.s32 %v463_v22, %v2372_v25  ;;  %s1965_s27 = sld [smem:[#allocation8 + $0x30]] }
  0xf7   : > { %v437_v31 = vsel %vm436_vm8, %v435_v8, %v434_v51  ;;  %v444_v46 = vsel %vm436_vm8, %v443_v30, %v2571_v50  ;;  %v1409_v33 = vmul.f32 %v1408_v39, %v2487_v44  ;;  %v527_v50 = vstv %s2609_s24  ;;  %s1898_s24 = sld [smem:[#allocation8 + $0x33]] }
  0xf8   : > { %v2589_v4 = vpop.permute.xlu1 %543  ;;  %v537_v5 = vpop.permute.xlu0 %536  ;;  %v2622_v43 = vadd.f32 %v437_v31, %v418_v35  ;;  %v446_v53 = vadd.f32 %v444_v46, %v425_v15  ;;  %v528_v63 = vmul.f32 %v527_v50, %v2393_v7  ;;  %v1428_v15 = vstv %s2656_s5  ;;  %s2779_s5 = sld [smem:[#allocation8 + $0x37]] }
  0xf9   : > { %v538_v38 = vrot.slane %v537_v5, 2  ;;  %v545_v57 = vrot.slane %v2589_v4, 2  ;;  %v1429_v50 = vmul.f32 %v1428_v15, %v2487_v44 }
  0xfa   : > { %1393 = vrot.lane.b32.xlu1 %v1389_v54, %s2183_s16  ;;  %1420 = vrot.lane.b32.xlu0 %v1411_v56, %s2184_s26  ;;  %v467_v56 = vrot.slane %v2622_v43, %v2620_v41  ;;  %v490_v21 = vcombine.high %v446_v53, %v446_v53  ;;  %v460_v37 = vcombine.high %v2622_v43, %v2622_v43 }
  0xfb   : > { %v539_v51 = vsel %vm330_vm3, %v537_v5, %v538_v38  ;;  %v2641_v5 = vrot.slane %v446_v53, %v2620_v41  ;;  %v546_v58 = vsel %vm330_vm3, %v2589_v4, %v545_v57 }
  0xfc   : > { %v2603_v26 = vpop.permute.xlu1 %563  ;;  %v557_v27 = vpop.permute.xlu0 %556  ;;  %v541_v61 = vadd.f32 %v539_v51, %v526_v47  ;;  %v548_v13 = vadd.f32 %v546_v58, %v528_v63  ;;  %v475_v18 = vcombine.high %v467_v56, %v467_v56  ;;  %v504_v32 = vrot.slane %v490_v21, %v2620_v41 }
  0xfd   : > { %v558_v48 = vrot.slane %v557_v27, 2  ;;  %v565_v6 = vrot.slane %v2603_v26, 2  ;;  %v474_v43 = vrot.slane %v460_v37, %v2620_v41  ;;  %v1613_v21 = vstv %s2697_s22  ;;  %s2193_s22 = smov 45  }
  0xfe   : > { %1576 = vrot.lane.b32.xlu1 %v1572_v9, %s2182_s29  ;;  %1603 = vrot.lane.b32.xlu0 %v1594_v14, %s2183_s16  ;;  %s2187_s29 = smov 51  }
  0xff   : > { %v559_v59 = vsel %vm351_vm4, %v557_v27, %v558_v48  ;;  %v566_v4 = vsel %vm351_vm4, %v2603_v26, %v565_v6  ;;  %v1592_v48 = vmul.f32 %v1591_v19, %v2521_v10  ;;  %v1631_v19 = vstv %s1965_s27  ;;  %s1975_s27 = sshll.u32 %s2244_s3, 7  ;;  %s2194_s3 = smov [#allocation9]  }
 0x100   : > { %v584_v29 = vpop.permute.xlu1 %583  ;;  %v577_v45 = vpop.permute.xlu0 %576  ;;  %v561_v1 = vadd.f32 %v559_v59, %v541_v61  ;;  %v568_v28 = vadd.f32 %v566_v4, %v548_v13  ;;  %v1633_v59 = vstv %s2673_s13  ;;  %s2820_s13 = sld [smem:[#allocation8 + $0x6]] }
 0x101   : > { %v578_v52 = vrot.slane %v577_v45, 2  ;;  %v585_v20 = vrot.slane %v584_v29, 2 }
 0x102   : > { %1044 = vrot.lane.b32.xlu1 %v1040_v12, %s2185_s11  ;;  %1230 = vrot.lane.b32.xlu0 %v1226_v36, %s2185_s11 }
 0x103   : > { %v579_v62 = vsel %vm372_vm5, %v577_v45, %v578_v52  ;;  %v586_v26 = vsel %vm372_vm5, %v584_v29, %v585_v20 }
 0x104   : > { %v605_v54 = vpop.permute.xlu1 %604  ;;  %v598_v55 = vpop.permute.xlu0 %597  ;;  %v581_v11 = vadd.f32 %v579_v62, %v561_v1  ;;  %v588_v38 = vadd.f32 %v586_v26, %v568_v28 }
 0x105   : > { %v599_v60 = vrot.slane %v598_v55, 6  ;;  %v606_v35 = vrot.slane %v605_v54, 6 }
 0x106   : > { %1413 = vrot.lane.b32.xlu1 %v1409_v33, %s2184_s26  ;;  %476 = vrot.lane.b32.xlu0 %v467_v56, %s2187_s29  ;;  %v505_v56 = vcombine.high %v2641_v5, %v2641_v5 }
 0x107   : > { %v600_v8 = vsel %vm394_vm6, %v599_v60, %v598_v55  ;;  %v607_v45 = vsel %vm394_vm6, %v606_v35, %v605_v54  ;;  %v1120_v54 = vstv %s2664_s6  ;;  %v931_v55 = vstv %s2666_s12  ;;  %s2189_s6 = smov 49   ;;  %s2806_s12 = sld [smem:[#allocation8 + $0x34]] }
 0x108   : > { %v625_v2 = vpop.permute.xlu1 %624  ;;  %v618_v3 = vpop.permute.xlu0 %617  ;;  %v602_v14 = vadd.f32 %v600_v8, %v581_v11  ;;  %v609_v47 = vadd.f32 %v607_v45, %v588_v38  ;;  %v1121_v61 = vmul.f32 %v1120_v54, %v2429_v49  ;;  %v932_v63 = vmul.f32 %v931_v55, %v2419_v40 }
 0x109   : > { %v619_v9 = vrot.slane %v618_v3, 6  ;;  %v626_v46 = vrot.slane %v625_v2, 6  ;;  %v1634_v8 = vmul.f32 %v1633_v59, %v2521_v10  ;;  %v1632_v45 = vmul.f32 %v1631_v19, %v2521_v10 }
 0x10a   : > { %506 = vrot.lane.b32.xlu1 %v2641_v5, %s2187_s29  ;;  %v1430_v5 = vstv %s2681_s7 }
 0x10b   : > { %v620_v7 = vsel %vm415_vm7, %v619_v9, %v618_v3  ;;  %v627_v52 = vsel %vm415_vm7, %v626_v46, %v625_v2 }
 0x10c   : > { %v645_v16 = vpop.permute.xlu1 %644  ;;  %v638_v17 = vpop.permute.xlu0 %637  ;;  %v622_v24 = vadd.f32 %v620_v7, %v602_v14  ;;  %v629_v60 = vadd.f32 %v627_v52, %v609_v47 }
 0x10d   : > { %v639_v22 = vrot.slane %v638_v17, 6  ;;  %v646_v53 = vrot.slane %v645_v16, 6 }
 0x10e   : > { %478 = vrot.lane.b32.xlu1 %v475_v18, %s2187_s29  ;;  %v1118_v18 = vstv %s2695_s14 }
 0x10f   : > { %v640_v27 = vsel %vm436_vm8, %v639_v22, %v638_v17  ;;  %v647_v2 = vsel %vm436_vm8, %v646_v53, %v645_v16  ;;  %v1431_v17 = vmul.f32 %v1430_v5, %v2487_v44  ;;  %v1119_v20 = vmul.f32 %v1118_v18, %v2429_v49 }
 0x110   : > { %v642_v30 = vadd.f32 %v640_v27, %v622_v24  ;;  %v2658_v31 = vpop.permute.xlu1 %746  ;;  %v2660_v12 = vpop.permute.xlu0 %739  ;;  %v649_v11 = vadd.f32 %v647_v2, %v629_v60  ;;  %v1614_v27 = vmul.f32 %v1613_v21, %v2521_v10  ;;  %v730_v53 = vstv %s1898_s24  ;;  %s228_s24 = scalar_lea.vmem [#allocation9], %s1867_s21  ;;  %s2108_s21 = sshll.u32 %s2194_s3, 4  ;;  %s2109_s21 = int_to_ptr.vmem [resolvable:$false] %s2108_s21 }
 0x111   : > { %v748_v54 = vrot.slane %v2658_v31, 2  ;;  %v731_v59 = vmul.f32 %v730_v53, %v2413_v34 }
 0x112   : > { %510 = vrot.lane.b32.xlu1 %v504_v32, %s2187_s29  ;;  %v670_v36 = vrot.slane %v642_v30, %v2620_v41  ;;  %v663_v57 = vcombine.high %v642_v30, %v642_v30  ;;  %v700_v24 = vrot.slane %v649_v11, %v2620_v41  ;;  %v693_v28 = vcombine.high %v649_v11, %v649_v11 }
 0x114   : > { %v2675_v39 = vpop.permute.xlu1 %766  ;;  %v2677_v42 = vpop.permute.xlu0 %949  ;;  %679 = vrot.lane.b32.xlu0 %v670_v36, %s2188_s8  ;;  %v678_v29 = vcombine.high %v670_v36, %v670_v36  ;;  %v677_v6 = vrot.slane %v663_v57, %v2620_v41  ;;  %v707_v49 = vrot.slane %v693_v28, %v2620_v41  ;;  %v708_v52 = vcombine.high %v700_v24, %v700_v24 }
 0x116   : > { %681 = vrot.lane.b32.xlu1 %v678_v29, %s2188_s8 }
 0x118   : > { %v2687_v33 = vpop.permute.xlu1 %759  ;;  %v2689_v51 = vpop.permute.xlu0 %786  ;;  %480 = vrot.lane.b32.xlu0 %v474_v43, %s2187_s29 }
 0x11a   : > { %1596 = vrot.lane.b32.xlu1 %v1592_v48, %s2183_s16  ;;  %s2709_s16 = sld [smem:[#allocation8 + $0x29]] }
 0x11c   : > { %v1137_v62 = vpop.permute.xlu1 %1136  ;;  %v943_v1 = vpop.permute.xlu0 %942  ;;  %508 = vrot.lane.b32.xlu0 %v505_v56, %s2187_s29  ;;  %s1940_s29 = sld [smem:[#allocation8 + $0x36]] }
 0x11d   : > { %v1138_v3 = vrot.slane %v1137_v62, 2  ;;  %v944_v58 = vrot.slane %v943_v1, 2 }
 0x11e   : > { %1433 = vrot.lane.b32.xlu1 %v1429_v50, %s2185_s11 }
 0x11f   : > { %v1139_v40 = vsel %vm330_vm3, %v1137_v62, %v1138_v3  ;;  %v945_v9 = vsel %vm330_vm3, %v943_v1, %v944_v58  ;;  %v768_v62 = vrot.slane %v2675_v39, 2 }
 0x120   : > { %v2716_v7 = vadd.f32 %v1139_v40, %v1121_v61  ;;  %v947_v13 = vadd.f32 %v945_v9, %v932_v63  ;;  %v2718_v14 = vpop.permute.xlu1 %969  ;;  %v2720_v16 = vpop.permute.xlu0 %779  ;;  %683 = vrot.lane.b32.xlu0 %v677_v6, %s2188_s8  ;;  %v1611_v32 = vstv %s2709_s16  ;;  %v749_v61 = vsel %vm330_vm3, %v2658_v31, %v748_v54  ;;  %s3142_s16 = sld [smem:[#allocation3]] }
 0x121   : > { %v1612_v37 = vmul.f32 %v1611_v32, %v2521_v10  ;;  %v751_v6 = vadd.f32 %v749_v61, %v731_v59  ;;  %v769_v40 = vsel %vm351_vm4, %v2675_v39, %v768_v62  ;;  %v788_v9 = vrot.slane %v2689_v51, 2 }
 0x122   : > { %1643 = vrot.lane.b32.xlu1 %v1634_v8, %s2185_s11  ;;  %v1323_v55 = vstv %s1940_s29  ;;  %v781_v59 = vrot.slane %v2720_v16, 2  ;;  %s1777_s29 = sshll.u32 %s228_s24, 4  ;;  %s3172_s29 = int_to_ptr.vmem [resolvable:$true] %s1777_s29 }
 0x123   : > { %v1324_v60 = vmul.f32 %v1323_v55, %v2445_v0  ;;  %v771_v21 = vadd.f32 %v769_v40, %v751_v6  ;;  %v761_v55 = vrot.slane %v2687_v33, 2  ;;  %p2111_p0 = scmp.lt.s32.totalorder %s3172_s29, %s2109_s21 }
 0x124   : > { %v2727_v4 = vpop.permute.xlu1 %807  ;;  %v1130_v22 = vpop.permute.xlu0 %1129  ;;  %1440 = vrot.lane.b32.xlu0 %v1431_v17, %s2185_s11 }
 0x125   : > { %v1131_v30 = vrot.slane %v1130_v22, 2  ;;  %v809_v18 = vrot.slane %v2727_v4, 6 }
 0x126   : > { %709 = vrot.lane.b32.xlu1 %v700_v24, %s2188_s8 }
 0x127   : > { %v1132_v44 = vsel %vm330_vm3, %v1130_v22, %v1131_v30 }
 0x128   : > { %v1134_v26 = vadd.f32 %v1132_v44, %v1119_v20  ;;  %v2736_v35 = vpop.permute.xlu1 %1156  ;;  %v1340_v36 = vpop.permute.xlu0 %1339  ;;  %1623 = vrot.lane.b32.xlu0 %v1614_v27, %s2184_s26  ;;  %v789_v20 = vsel %vm372_vm5, %v2689_v51, %v788_v9  ;;  %v810_v27 = vsel %vm394_vm6, %v809_v18, %v2727_v4  ;;  %v741_v51 = vrot.slane %v2660_v12, 2 }
 0x129   : > { %v1341_v56 = vrot.slane %v1340_v36, 2  ;;  %v791_v28 = vadd.f32 %v789_v20, %v771_v21  ;;  %v782_v9 = vsel %vm372_vm5, %v2720_v16, %v781_v59 }
 0x12a   : > { %713 = vrot.lane.b32.xlu1 %v707_v49, %s2188_s8  ;;  %v742_v54 = vsel %vm330_vm3, %v2660_v12, %v741_v51 }
 0x12b   : > { %v1342_v63 = vsel %vm330_vm3, %v1340_v36, %v1341_v56 }
 0x12c   : > { %v963_v38 = vpop.permute.xlu1 %962  ;;  %v2742_v29 = vpop.permute.xlu0 %990  ;;  %1616 = vrot.lane.b32.xlu0 %v1612_v37, %s2184_s26  ;;  %v1344_v8 = vadd.f32 %v1342_v63, %v1324_v60  ;;  %v728_v37 = vstv %s1897_s25  ;;  %v1526_v60 = vstv %s2779_s5  ;;  %s3170_s5 = scalar_lea.hbm %s3218_s4, %s1975_s27 }
 0x12d   : > { %v964_v46 = vrot.slane %v963_v38, 2 }
 0x12f   : > { %v965_v43 = vsel %vm351_vm4, %v963_v38, %v964_v46 }
 0x130   : > { %v2747_v48 = vadd.f32 %v965_v43, %v947_v13  ;;  %v2749_v15 = vpop.permute.xlu1 %800  ;;  %v828_v47 = vpop.permute.xlu0 %827  ;;  %1636 = vrot.lane.b32.xlu0 %v1632_v45, %s2185_s11  ;;  %s1939_s11 = sld [smem:[#allocation8 + $0x5]]  ;;  %v729_v43 = vmul.f32 %v728_v37, %v2413_v34 }
 0x131   : > { %v829_v22 = vrot.slane %v828_v47, 6 }
 0x132   : > { %v744_v62 = vadd.f32 %v742_v54, %v729_v43  ;;  %v971_v43 = vrot.slane %v2718_v14, 2 }
 0x133   : > { %v830_v30 = vsel %vm415_vm7, %v829_v22, %v828_v47 }
 0x134   : > { %v1150_v50 = vpop.permute.xlu1 %1149  ;;  %v2753_v57 = vpop.permute.xlu0 %1177  ;;  %711 = vrot.lane.b32.xlu0 %v708_v52, %s2188_s8  ;;  %s2190_s8 = smov 47  }
 0x135   : > { %v1151_v10 = vrot.slane %v1150_v50, 2 }
 0x136   : > { %v1321_v32 = vstv %s1939_s11 }
 0x137   : > { %v1152_v1 = vsel %vm351_vm4, %v1150_v50, %v1151_v10  ;;  %v1322_v45 = vmul.f32 %v1321_v32, %v2445_v0 }
 0x138   : > { %v2763_v2 = vadd.f32 %v1152_v1, %v1134_v26  ;;  %v1333_v3 = vpop.permute.xlu1 %1332  ;;  %v1360_v58 = vpop.permute.xlu0 %1359  ;;  %v812_v26 = vadd.f32 %v810_v27, %v791_v28 }
 0x139   : > { %v1361_v5 = vrot.slane %v1360_v58, 2  ;;  %v1334_v44 = vrot.slane %v1333_v3, 2 }
 0x13a   : > { %v832_v38 = vadd.f32 %v830_v30, %v812_v26 }
 0x13b   : > { %v1362_v31 = vsel %vm351_vm4, %v1360_v58, %v1361_v5  ;;  %v1335_v4 = vsel %vm330_vm3, %v1333_v3, %v1334_v44  ;;  %v762_v58 = vsel %vm351_vm4, %v2687_v33, %v761_v55  ;;  %v802_v5 = vrot.slane %v2749_v15, 6 }
 0x13c   : > { %v1364_v11 = vadd.f32 %v1362_v31, %v1344_v8  ;;  %v1543_v13 = vpop.permute.xlu1 %1542  ;;  %v2769_v17 = vpop.permute.xlu0 %983  ;;  %v1337_v50 = vadd.f32 %v1335_v4, %v1322_v45  ;;  %v1527_v8 = vmul.f32 %v1526_v60, %v2468_v23  ;;  %v764_v33 = vadd.f32 %v762_v58, %v744_v62 }
 0x13d   : > { %v1544_v61 = vrot.slane %v1543_v13, 2  ;;  %v803_v28 = vsel %vm394_vm6, %v802_v5, %v2749_v15  ;;  %v951_v15 = vrot.slane %v2677_v42, 2  ;;  %v1158_v62 = vrot.slane %v2736_v35, 2 }
 0x13e   : > { %v784_v32 = vadd.f32 %v782_v9, %v764_v33 }
 0x13f   : > { %v1545_v31 = vsel %vm330_vm3, %v1543_v13, %v1544_v61 }
 0x140   : > { %v2774_v24 = vpop.permute.xlu1 %1011  ;;  %v821_v39 = vpop.permute.xlu0 %820  ;;  %v1547_v16 = vadd.f32 %v1545_v31, %v1527_v8 }
 0x141   : > { %v822_v18 = vrot.slane %v821_v39, 6 }
 0x143   : > { %v823_v13 = vsel %vm415_vm7, %v822_v18, %v821_v39 }
 0x144   : > { %v848_v36 = vpop.permute.xlu1 %847  ;;  %v2781_v49 = vpop.permute.xlu0 %1170 }
 0x145   : > { %v849_v19 = vrot.slane %v848_v36, 6 }
 0x147   : > { %v850_v46 = vsel %vm436_vm8, %v849_v19, %v848_v36 }
 0x148   : > { %v852_v47 = vadd.f32 %v850_v46, %v832_v38  ;;  %v2788_v52 = vpop.permute.xlu1 %1197  ;;  %v1353_v53 = vpop.permute.xlu0 %1352  ;;  %v933_v38 = vstv %s2806_s12  ;;  %s2104_s12 = scalar_lea.vmem %s3172_s29, 128 }
 0x149   : > { %v1354_v56 = vrot.slane %v1353_v53, 2  ;;  %p2105_p9 = scmp.ne.s32.totalorder %s3172_s29, %s2104_s12 }
 0x14a   : > { %v896_v10 = vcombine.high %v852_v47, %v852_v47  ;;  %v903_v0 = vrot.slane %v852_v47, %v2620_v41  ;;  %v2058_v47 = vld [vmem:[#allocation2] sm:$0x3f] }
 0x14b   : > { %v1355_v34 = vsel %vm351_vm4, %v1353_v53, %v1354_v56  ;;  %v934_v53 = vmul.f32 %v2058_v47, %v933_v38  ;;  %v952_v56 = vsel %vm330_vm3, %v2677_v42, %v951_v15  ;;  %p2106_p13 = pnand %p2105_p9, %p3257_p11 }
 0x14c   : > { %v2797_v63 = vadd.f32 %v1355_v34, %v1337_v50  ;;  %v1381_v1 = vpop.permute.xlu1 %1380  ;;  %v1536_v3 = vpop.permute.xlu0 %1535  ;;  %912 = vrot.lane.b32.xlu0 %v903_v0, %s2189_s6  ;;  %v911_v12 = vcombine.high %v903_v0, %v903_v0  ;;  %v910_v40 = vrot.slane %v896_v10, %v2620_v41  ;;  %v992_v50 = vrot.slane %v2742_v29, 6 }
 0x14d   : > { %v1382_v6 = vrot.slane %v1381_v1, 6  ;;  %v1524_v10 = vstv %s2820_s13  ;;  %v1537_v0 = vrot.slane %v1536_v3, 2  ;;  %v972_v34 = vsel %vm351_vm4, %v2718_v14, %v971_v43  ;;  %p2107_p7 = pneg %p2106_p13 }
 0x14e   : > { %914 = vrot.lane.b32.xlu1 %v911_v12, %s2189_s6  ;;  %v954_v12 = vadd.f32 %v952_v56, %v934_v53  ;;  %v1525_v42 = vmul.f32 %v1524_v10, %v2468_v23  ;;  %v993_v5 = vsel %vm372_vm5, %v992_v50, %v2742_v29  ;;  %v1159_v23 = vsel %vm351_vm4, %v2736_v35, %v1158_v62 }
 0x14f   : > { %v1383_v21 = vsel %vm372_vm5, %v1382_v6, %v1381_v1  ;;  %v1013_v1 = vrot.slane %v2774_v24, 6  ;;  %v1179_v6 = vrot.slane %v2753_v57, 6  ;;  %v1538_v8 = vsel %vm330_vm3, %v1536_v3, %v1537_v0 }
 0x150   : > { %v2812_v20 = vadd.f32 %v1383_v21, %v1364_v11  ;;  %v1563_v22 = vpop.permute.xlu1 %1562  ;;  %v2814_v27 = vpop.permute.xlu0 %1004  ;;  %916 = vrot.lane.b32.xlu0 %v910_v40, %s2189_s6  ;;  %v805_v11 = vadd.f32 %v803_v28, %v784_v32  ;;  %v974_v14 = vadd.f32 %v972_v34, %v954_v12  ;;  %v1199_v21 = vrot.slane %v2788_v52, 6 }
 0x151   : > { %v1564_v30 = vrot.slane %v1563_v22, 2  ;;  %v1014_v18 = vsel %vm394_vm6, %v1013_v1, %v2774_v24  ;;  %v1180_v3 = vsel %vm372_vm5, %v1179_v6, %v2753_v57  ;;  %v1172_v10 = vrot.slane %v2781_v49, 6 }
 0x152   : > { %v825_v19 = vadd.f32 %v823_v13, %v805_v11  ;;  %v995_v33 = vadd.f32 %v993_v5, %v974_v14  ;;  %v1200_v11 = vsel %vm394_vm6, %v1199_v21, %v2788_v52  ;;  %v1006_v0 = vrot.slane %v2814_v27, 6 }
 0x153   : > { %v1565_v44 = vsel %vm351_vm4, %v1563_v22, %v1564_v30  ;;  %v1540_v22 = vadd.f32 %v1538_v8, %v1525_v42  ;;  %v1173_v6 = vsel %vm372_vm5, %v1172_v10, %v2781_v49 }
 0x154   : > { %v2823_v26 = vadd.f32 %v1565_v44, %v1547_v16  ;;  %v1032_v36 = vpop.permute.xlu1 %1031  ;;  %v841_v37 = vpop.permute.xlu0 %840  ;;  %v1161_v16 = vadd.f32 %v1159_v23, %v2716_v7  ;;  %v1016_v13 = vadd.f32 %v1014_v18, %v995_v33  ;;  %v1007_v8 = vsel %vm394_vm6, %v1006_v0, %v2814_v27 }
 0x155   : > { %v842_v51 = vrot.slane %v841_v37, 6  ;;  %v1033_v40 = vrot.slane %v1032_v36, 6  ;;  %v1175_v18 = vadd.f32 %v1173_v6, %v2763_v2 }
 0x157   : > { %v843_v45 = vsel %vm436_vm8, %v842_v51, %v841_v37  ;;  %v1034_v28 = vsel %vm415_vm7, %v1033_v40, %v1032_v36  ;;  %v1182_v51 = vadd.f32 %v1180_v3, %v1161_v16 }
 0x158   : > { %v845_v4 = vadd.f32 %v843_v45, %v825_v19  ;;  %v2828_v46 = vpop.permute.xlu1 %1190  ;;  %v1218_v39 = vpop.permute.xlu0 %1217  ;;  %v1036_v19 = vadd.f32 %v1034_v28, %v1016_v13 }
 0x159   : > { %v1219_v30 = vrot.slane %v1218_v39, 6  ;;  %v1202_v38 = vadd.f32 %v1200_v11, %v1182_v51  ;;  %v1192_v1 = vrot.slane %v2828_v46, 6  ;;  %v2914_v11 = vld [vmem:[%s3215_s1] sm:$0x3] }
 0x15a   : > { %v866_v54 = vcombine.high %v845_v4, %v845_v4  ;;  %v873_v55 = vrot.slane %v845_v4, %v2620_v41  ;;  %vm447_vm9 = vcmp.ge.s32.totalorder %v2914_v11, 3  ;;  %vm650_vm10 = vcmp.ge.s32.totalorder %v2914_v11, 2 }
 0x15b   : > { %v1220_v57 = vsel %vm415_vm7, %v1219_v30, %v1218_v39  ;;  %vm853_vm1 = vcmp.ge.s32.totalorder %v2914_v11, 1  ;;  %vm1243_vm2 = vcmp.lt.s32.totalorder %v2914_v11, 15  ;;  %vm1446_vm3 = vcmp.lt.s32.totalorder %v2914_v11, 14 }
 0x15c   : > { %v881_v59 = vcombine.high %v873_v55, %v873_v55  ;;  %v2836_v60 = vpop.permute.xlu1 %1373  ;;  %v2838_v61 = vpop.permute.xlu0 %1400  ;;  %882 = vrot.lane.b32.xlu1 %v873_v55, %s2189_s6  ;;  %v880_v58 = vrot.slane %v866_v54, %v2620_v41  ;;  %v1222_v43 = vadd.f32 %v1220_v57, %v1202_v38  ;;  %v985_v54 = vrot.slane %v2769_v17, 6 }
 0x15e   : > { %884 = vrot.lane.b32.xlu0 %v881_v59, %s2189_s6  ;;  %v986_v62 = vsel %vm372_vm5, %v985_v54, %v2769_v17 }
 0x15f   : > { %v988_v14 = vadd.f32 %v986_v62, %v2747_v48 }
 0x160   : > { %v1556_v9 = vpop.permute.xlu1 %1555  ;;  %v2852_v31 = vpop.permute.xlu0 %1583  ;;  %886 = vrot.lane.b32.xlu1 %v880_v58, %s2189_s6  ;;  %s1763_s6 = scalar_lea.sflag [#allocation6], %s2355_s15 }
 0x161   : > { %v1557_v29 = vrot.slane %v1556_v9, 2  ;;  %v1009_v21 = vadd.f32 %v1007_v8, %v988_v14 }
 0x163   : > { %v1558_v32 = vsel %vm351_vm4, %v1556_v9, %v1557_v29  ;;  %v1193_v9 = vsel %vm394_vm6, %v1192_v1, %v2828_v46  ;;  %v2945_v1 = vsub.s32 1, %v2372_v25  ;;  %vm888_vm4 = vcmask 400384  }
 0x164   : > { %v2865_v35 = vadd.f32 %v1558_v32, %v1540_v22  ;;  %v1025_v44 = vpop.permute.xlu1 %1024  ;;  %v1052_v24 = vpop.permute.xlu0 %1051  ;;  %v1195_v3 = vadd.f32 %v1193_v9, %v1175_v18  ;;  %v1402_v18 = vrot.slane %v2838_v61, 6 }
 0x165   : > { %v1053_v37 = vrot.slane %v1052_v24, 6  ;;  %v1026_v12 = vrot.slane %v1025_v44, 6 }
 0x167   : > { %v1054_v36 = vsel %vm436_vm8, %v1053_v37, %v1052_v24  ;;  %v1027_v23 = vsel %vm415_vm7, %v1026_v12, %v1025_v44 }
 0x168   : > { %v1056_v15 = vadd.f32 %v1054_v36, %v1036_v19  ;;  %v1211_v45 = vpop.permute.xlu1 %1210  ;;  %v1238_v4 = vpop.permute.xlu0 %1237  ;;  %v1029_v28 = vadd.f32 %v1027_v23, %v1009_v21  ;;  %v2923_v36 = vsub.s32 0, %v2372_v25  ;;  %v1375_v25 = vrot.slane %v2836_v60, 6 }
 0x169   : > { %v1239_v7 = vrot.slane %v1238_v4, 6  ;;  %v1212_v40 = vrot.slane %v1211_v45, 6 }
 0x16a   : > { %v1087_v47 = vcombine.high %v1056_v15, %v1056_v15  ;;  %v1094_v53 = vrot.slane %v1056_v15, %v2620_v41 }
 0x16b   : > { %v1240_v52 = vsel %vm436_vm8, %v1239_v7, %v1238_v4  ;;  %v1213_v48 = vsel %vm415_vm7, %v1212_v40, %v1211_v45  ;;  %v2191_v45 = vmov 0  }
 0x16c   : > { %v1102_v55 = vcombine.high %v1094_v53, %v1094_v53  ;;  %v1242_v56 = vadd.f32 %v1240_v52, %v1222_v43  ;;  %v2874_v50 = vpop.permute.xlu1 %1393  ;;  %v2876_v39 = vpop.permute.xlu0 %1420  ;;  %1103 = vrot.lane.b32.xlu0 %v1094_v53, %s2184_s26  ;;  %v1101_v59 = vrot.slane %v1087_v47, %v2620_v41  ;;  %v1215_v2 = vadd.f32 %v1213_v48, %v1195_v3 }
 0x16d   : > { %v448_v4 = vsel %vm447_vm9, 1, %v2191_v45  ;;  %v651_v43 = vsel %vm650_vm10, 1, %v2191_v45  ;;  %vm1278_vm9 = vcmask 384000  }
 0x16e   : > { %v1293_v34 = vrot.slane %v1242_v56, %v2620_v41  ;;  %1105 = vrot.lane.b32.xlu1 %v1102_v55, %s2184_s26  ;;  %v1286_v42 = vcombine.high %v1242_v56, %v1242_v56  ;;  %v452_v54 = vrot.slane %v448_v4, %v2923_v36  ;;  %v655_v52 = vrot.slane %v651_v43, %v2923_v36 }
 0x16f   : > { %v659_v9 = vrot.slane %v651_v43, %v2945_v1 }
 0x170   : > { %v2887_v58 = vpop.permute.xlu1 %1576  ;;  %v2889_v5 = vpop.permute.xlu0 %1603  ;;  %1107 = vrot.lane.b32.xlu0 %v1101_v59, %s2184_s26  ;;  %v1301_v17 = vcombine.high %v1293_v34, %v1293_v34  ;;  %v1300_v49 = vrot.slane %v1286_v42, %v2620_v41  ;;  %vm2935_vm13 = vcmp.eq.s32.totalorder %v452_v54, 1  ;;  %vm2939_vm14 = vcmp.eq.s32.totalorder %v655_v52, 1 }
 0x171   : > { %vm2972_vm0 = vcmp.eq.s32.totalorder %v659_v9, 1 }
 0x172   : > { %1302 = vrot.lane.b32.xlu1 %v1293_v34, %s2190_s8 }
 0x174   : > { %v1045_v29 = vpop.permute.xlu1 %1044  ;;  %v1231_v33 = vpop.permute.xlu0 %1230  ;;  %1304 = vrot.lane.b32.xlu0 %v1301_v17, %s2190_s8  ;;  %v456_v17 = vrot.slane %v448_v4, %v2945_v1 }
 0x175   : > { %v1046_v27 = vrot.slane %v1045_v29, 6  ;;  %v1232_v22 = vrot.slane %v1231_v33, 6 }
 0x176   : > { %1306 = vrot.lane.b32.xlu1 %v1300_v49, %s2190_s8  ;;  %vm2968_vm15 = vcmp.eq.s32.totalorder %v456_v17, 1 }
 0x177   : > { %v1047_v46 = vsel %vm436_vm8, %v1046_v27, %v1045_v29  ;;  %v1233_v30 = vsel %vm436_vm8, %v1232_v22, %v1231_v33  ;;  %v1395_v29 = vrot.slane %v2874_v50, 6  ;;  %v1422_v33 = vrot.slane %v2876_v39, 6 }
 0x178   : > { %v1049_v32 = vadd.f32 %v1047_v46, %v1029_v28  ;;  %v2908_v16 = vpop.permute.xlu1 %1413  ;;  %v1235_v24 = vadd.f32 %v1233_v30, %v1215_v2  ;;  %v477_v15 = vpop.permute.xlu0 %476  ;;  %v1376_v22 = vsel %vm372_vm5, %v1375_v25, %v2836_v60  ;;  %v1403_v46 = vsel %vm394_vm6, %v1402_v18, %v2838_v61 }
 0x179   : > { %v1585_v30 = vrot.slane %v2852_v31, 6  ;;  %v1415_v2 = vrot.slane %v2908_v16, 6  ;;  %v1605_v61 = vrot.slane %v2889_v5, 6 }
 0x17a   : > { %v1058_v13 = vcombine.high %v1049_v32, %v1049_v32  ;;  %v1065_v44 = vrot.slane %v1049_v32, %v2620_v41  ;;  %v1263_v57 = vrot.slane %v1235_v24, %v2620_v41  ;;  %v1256_v38 = vcombine.high %v1235_v24, %v1235_v24 }
 0x17b   : > { %v1423_v24 = vsel %vm415_vm7, %v1422_v33, %v2876_v39  ;;  %v1606_v39 = vsel %vm394_vm6, %v1605_v61, %v2889_v5 }
 0x17c   : > { %v1073_v37 = vcombine.high %v1065_v44, %v1065_v44  ;;  %v507_v51 = vpop.permute.xlu1 %506  ;;  %1074 = vrot.lane.b32.xlu0 %v1065_v44, %s2184_s26  ;;  %v1072_v19 = vrot.slane %v1058_v13, %v2620_v41  ;;  %v1271_v53 = vcombine.high %v1263_v57, %v1263_v57  ;;  %v1270_v55 = vrot.slane %v1256_v38, %v2620_v41 }
 0x17d   : > { %v1396_v13 = vsel %vm394_vm6, %v1395_v29, %v2874_v50  ;;  %v1586_v50 = vsel %vm372_vm5, %v1585_v30, %v2852_v31  ;;  %v1578_v31 = vrot.slane %v2887_v58, 6 }
 0x17e   : > { %1076 = vrot.lane.b32.xlu1 %v1073_v37, %s2184_s26 }
 0x17f   : > { %v1579_v17 = vsel %vm372_vm5, %v1578_v31, %v2887_v58  ;;  %vm1649_vm5 = vcmp.lt.s32.totalorder %v2914_v11, 13 }
 0x180   : > { %v479_v7 = vpop.permute.xlu1 %478  ;;  %1078 = vrot.lane.b32.xlu0 %v1072_v19, %s2184_s26  ;;  %v1378_v19 = vadd.f32 %v1376_v22, %v2797_v63  ;;  %v1588_v63 = vadd.f32 %v1586_v50, %v2823_v26  ;;  %s2192_s26 = smov 46   ;;  %v1581_v33 = vadd.f32 %v1579_v17, %v2865_v35 }
 0x181   : > { %v483_v47 = vsel %vm482_vm11, %v477_v15, %v479_v7  ;;  %v1416_v15 = vsel %vm415_vm7, %v1415_v2, %v2908_v16 }
 0x182   : > { %1272 = vrot.lane.b32.xlu1 %v1263_v57, %s2190_s8  ;;  %v487_v12 = vsel %vm2935_vm13, %v483_v47, 0.0  ;;  %v1405_v57 = vadd.f32 %v1403_v46, %v2812_v20 }
 0x184   : > { %v511_v56 = vpop.permute.xlu1 %510  ;;  %1274 = vrot.lane.b32.xlu0 %v1271_v53, %s2190_s8  ;;  %v1425_v43 = vadd.f32 %v1423_v24, %v1405_v57 }
 0x186   : > { %v680_v10 = vpop.permute.xlu0 %679  ;;  %1276 = vrot.lane.b32.xlu1 %v1270_v55, %s2190_s8 }
 0x188   : > { %v682_v34 = vpop.permute.xlu1 %681 }
 0x189   : > { %v686_v62 = vsel %vm685_vm12, %v680_v10, %v682_v34  ;;  %v1608_v10 = vadd.f32 %v1606_v39, %v1588_v63 }
 0x18a   : > { %v690_v42 = vsel %vm2939_vm14, %v686_v62, 0.0  ;;  %v481_v6 = vpop.permute.xlu0 %480 }
 0x18b   : > { %v2951_v8 = vadd.f32 %v690_v42, %v487_v12  ;;  %v484_v40 = vsel %vm482_vm11, %v479_v7, %v481_v6  ;;  %v1398_v7 = vadd.f32 %v1396_v13, %v1378_v19 }
 0x18c   : > { %v2954_v14 = vpop.permute.xlu1 %1596  ;;  %v488_v44 = vsel %vm2968_vm15, %v484_v40, 0.0 }
 0x18d   : > { %v1418_v20 = vadd.f32 %v1416_v15, %v1398_v7  ;;  %v1598_v5 = vrot.slane %v2954_v14, 6 }
 0x18e   : > { %v509_v23 = vpop.permute.xlu0 %508 }
 0x18f   : > { %v2961_v21 = vsel %vm482_vm11, %v507_v51, %v509_v23  ;;  %v2964_v49 = vsel %vm482_vm11, %v509_v23, %v511_v56  ;;  %v1599_v29 = vsel %vm394_vm6, %v1598_v5, %v2954_v14  ;;  %v1244_v5 = vsel %vm1243_vm2, 1, %v2191_v45 }
 0x190   : > { %v1434_v3 = vpop.permute.xlu1 %1433  ;;  %v1601_v30 = vadd.f32 %v1599_v29, %v1581_v33  ;;  %v1248_v17 = vrot.slane %v1244_v5, %v2923_v36 }
 0x191   : > { %v1435_v37 = vrot.slane %v1434_v3, 6 }
 0x192   : > { %v684_v28 = vpop.permute.xlu0 %683  ;;  %vm3059_vm10 = vcmp.eq.s32.totalorder %v1248_v17, 1 }
 0x193   : > { %v687_v32 = vsel %vm685_vm12, %v682_v34, %v684_v28  ;;  %v1436_v47 = vsel %vm436_vm8, %v1435_v37, %v1434_v3 }
 0x194   : > { %v691_v60 = vsel %vm2972_vm0, %v687_v32, 0.0  ;;  %v1644_v54 = vpop.permute.xlu1 %1643  ;;  %v1438_v34 = vadd.f32 %v1436_v47, %v1418_v20 }
 0x195   : > { %v2992_v51 = vadd.f32 %v691_v60, %v488_v44  ;;  %v1645_v56 = vrot.slane %v1644_v54, 6 }
 0x196   : > { %v1441_v38 = vpop.permute.xlu0 %1440  ;;  %v1466_v23 = vrot.slane %v1438_v34, %v2620_v41  ;;  %v1459_v22 = vcombine.high %v1438_v34, %v1438_v34 }
 0x197   : > { %v1442_v4 = vrot.slane %v1441_v38, 6  ;;  %v1646_v9 = vsel %vm436_vm8, %v1645_v56, %v1644_v54 }
 0x198   : > { %v1474_v2 = vcombine.high %v1466_v23, %v1466_v23  ;;  %v1473_v13 = vrot.slane %v1459_v22, %v2620_v41  ;;  %v710_v50 = vpop.permute.xlu1 %709 }
 0x199   : > { %v1443_v53 = vsel %vm436_vm8, %v1442_v4, %v1441_v38 }
 0x19a   : > { %v1445_v52 = vadd.f32 %v1443_v53, %v1425_v43  ;;  %v1624_v55 = vpop.permute.xlu0 %1623 }
 0x19b   : > { %v1625_v16 = vrot.slane %v1624_v55, 6 }
 0x19c   : > { %v1489_v62 = vcombine.high %v1445_v52, %v1445_v52  ;;  %v1496_v12 = vrot.slane %v1445_v52, %v2620_v41  ;;  %v714_v4 = vpop.permute.xlu1 %713 }
 0x19d   : > { %v1626_v42 = vsel %vm415_vm7, %v1625_v16, %v1624_v55 }
 0x19e   : > { %v1504_v6 = vcombine.high %v1496_v12, %v1496_v12  ;;  %v1628_v40 = vadd.f32 %v1626_v42, %v1608_v10  ;;  %1505 = vrot.lane.b32.xlu0 %v1496_v12, %s2192_s26  ;;  %v1617_v26 = vpop.permute.xlu0 %1616  ;;  %v1503_v18 = vrot.slane %v1489_v62, %v2620_v41  ;;  %v854_v62 = vsel %vm853_vm1, 1, %v2191_v45 }
 0x19f   : > { %v1618_v25 = vrot.slane %v1617_v26, 6  ;;  %vm1481_vm1 = vcmask 375808  }
 0x1a0   : > { %1507 = vrot.lane.b32.xlu1 %v1504_v6, %s2192_s26  ;;  %v1648_v3 = vadd.f32 %v1646_v9, %v1628_v40  ;;  %v858_v6 = vrot.slane %v854_v62, %v2923_v36  ;;  %v862_v40 = vrot.slane %v854_v62, %v2945_v1  ;;  %v1252_v9 = vrot.slane %v1244_v5, %v2945_v1 }
 0x1a1   : > { %v1619_v46 = vsel %vm415_vm7, %v1618_v25, %v1617_v26  ;;  %v1447_v26 = vsel %vm1446_vm3, 1, %v2191_v45 }
 0x1a2   : > { %1509 = vrot.lane.b32.xlu0 %v1503_v18, %s2192_s26  ;;  %v1637_v28 = vpop.permute.xlu0 %1636  ;;  %v1699_v44 = vrot.slane %v1648_v3, %v2620_v41  ;;  %v1621_v60 = vadd.f32 %v1619_v46, %v1601_v30  ;;  %v1692_v14 = vcombine.high %v1648_v3, %v1648_v3  ;;  %v1451_v18 = vrot.slane %v1447_v26, %v2923_v36 }
 0x1a3   : > { %v1638_v58 = vrot.slane %v1637_v28, 6  ;;  %vm3050_vm6 = vcmp.eq.s32.totalorder %v858_v6, 1  ;;  %vm3063_vm11 = vcmp.eq.s32.totalorder %v1252_v9, 1  ;;  %v1650_v30 = vsel %vm1649_vm5, 1, %v2191_v45 }
 0x1a4   : > { %1475 = vrot.lane.b32.xlu1 %v1466_v23, %s2192_s26  ;;  %v1707_v24 = vcombine.high %v1699_v44, %v1699_v44  ;;  %v1706_v37 = vrot.slane %v1692_v14, %v2620_v41 }
 0x1a5   : > { %v1639_v32 = vsel %vm436_vm8, %v1638_v58, %v1637_v28  ;;  %vm3054_vm8 = vcmp.eq.s32.totalorder %v862_v40, 1 }
 0x1a6   : > { %1477 = vrot.lane.b32.xlu0 %v1474_v2, %s2192_s26  ;;  %v1641_v35 = vadd.f32 %v1639_v32, %v1621_v60  ;;  %v712_v15 = vpop.permute.xlu0 %711  ;;  %v516_v2 = vsel %vm2935_vm13, %v2961_v21, 0.0  ;;  %v517_v60 = vsel %vm2968_vm15, %v2964_v49, 0.0 }
 0x1a7   : > { %v715_v23 = vsel %vm685_vm12, %v710_v50, %v712_v15  ;;  %v716_v33 = vsel %vm685_vm12, %v712_v15, %v714_v4  ;;  %vm3080_vm12 = vcmp.eq.s32.totalorder %v1451_v18, 1 }
 0x1a8   : > { %1479 = vrot.lane.b32.xlu1 %v1473_v13, %s2192_s26  ;;  %v1669_v61 = vrot.slane %v1641_v35, %v2620_v41  ;;  %v1662_v19 = vcombine.high %v1641_v35, %v1641_v35  ;;  %v719_v32 = vsel %vm2939_vm14, %v715_v23, 0.0  ;;  %v720_v14 = vsel %vm2972_vm0, %v716_v33, 0.0 }
 0x1a9   : > { %v1654_v35 = vrot.slane %v1650_v30, %v2923_v36  ;;  %v723_v48 = vadd.f32 %v719_v32, %v516_v2  ;;  %vm1684_vm14 = vcmask 367616  }
 0x1aa   : > { %1708 = vrot.lane.b32.xlu0 %v1699_v44, %s2193_s22  ;;  %v1677_v57 = vcombine.high %v1669_v61, %v1669_v61  ;;  %v1676_v38 = vrot.slane %v1662_v19, %v2620_v41  ;;  %v1455_v44 = vrot.slane %v1447_v26, %v2945_v1  ;;  %v724_v19 = vadd.f32 %v720_v14, %v517_v60 }
 0x1ab   : > { %vm3109_vm15 = vcmp.eq.s32.totalorder %v1654_v35, 1 }
 0x1ac   : > { %1710 = vrot.lane.b32.xlu1 %v1707_v24, %s2193_s22  ;;  %v1658_v24 = vrot.slane %v1650_v30, %v2945_v1  ;;  %vm3095_vm13 = vcmp.eq.s32.totalorder %v1455_v44, 1 }
 0x1ae   : > { %1712 = vrot.lane.b32.xlu0 %v1706_v37, %s2193_s22  ;;  %vm3113_vm0 = vcmp.eq.s32.totalorder %v1658_v24, 1 }
 0x1b0   : > { %1678 = vrot.lane.b32.xlu1 %v1669_v61, %s2193_s22 }
 0x1b2   : > { %1680 = vrot.lane.b32.xlu0 %v1677_v57, %s2193_s22 }
 0x1b4   : > { %1682 = vrot.lane.b32.xlu1 %v1676_v38, %s2193_s22 }
 0x1be   : > { %v913_v7 = vpop.permute.xlu0 %912 }
 0x1c0   : > { %v915_v43 = vpop.permute.xlu1 %914 }
 0x1c1   : > { %v918_v28 = vsel %vm888_vm4, %v913_v7, %v915_v43 }
 0x1c2   : > { %v917_v39 = vpop.permute.xlu0 %916  ;;  %v922_v59 = vsel %vm3050_vm6, %v918_v28, 0.0 }
 0x1c3   : > { %v919_v13 = vsel %vm888_vm4, %v915_v43, %v917_v39  ;;  %v926_v15 = vadd.f32 %v922_v59, %v723_v48 }
 0x1c4   : > { %v923_v49 = vsel %vm3054_vm8, %v919_v13, 0.0 }
 0x1c5   : > { %v927_v43 = vadd.f32 %v923_v49, %v724_v19  ;;  %v1732_v49 = vstv %s3142_s16 }
 0x1ce   : > { %v883_v47 = vpop.permute.xlu1 %882 }
 0x1d0   : > { %v885_v53 = vpop.permute.xlu0 %884 }
 0x1d1   : > { %v889_v21 = vsel %vm888_vm4, %v883_v47, %v885_v53 }
 0x1d2   : > { %v887_v63 = vpop.permute.xlu1 %886  ;;  %v893_v1 = vsel %vm3050_vm6, %v889_v21, 0.0 }
 0x1d3   : > { %v890_v27 = vsel %vm888_vm4, %v885_v53, %v887_v63 }
 0x1d4   : > { %v894_v39 = vsel %vm3054_vm8, %v890_v27, 0.0 }
 0x1d5   : > { %v925_v6 = vadd.f32 %v894_v39, %v2992_v51 }
 0x1de   : > { %v1104_v20 = vpop.permute.xlu0 %1103 }
 0x1e0   : > { %v1106_v54 = vpop.permute.xlu1 %1105 }
 0x1e1   : > { %v1109_v57 = vsel %vm415_vm7, %v1104_v20, %v1106_v54 }
 0x1e2   : > { %v1108_v52 = vpop.permute.xlu0 %1107  ;;  %v1113_v63 = vadd.f32 %v1109_v57, %v926_v15 }
 0x1e3   : > { %v1110_v4 = vsel %vm415_vm7, %v1106_v54, %v1108_v52  ;;  %v924_v52 = vadd.f32 %v893_v1, %v2951_v8 }
 0x1e4   : > { %v1303_v55 = vpop.permute.xlu1 %1302 }
 0x1e6   : > { %v1305_v31 = vpop.permute.xlu0 %1304 }
 0x1e7   : > { %v1308_v61 = vsel %vm1278_vm9, %v1303_v55, %v1305_v31 }
 0x1e8   : > { %v1307_v56 = vpop.permute.xlu1 %1306  ;;  %v1312_v47 = vsel %vm3059_vm10, %v1308_v61, 0.0 }
 0x1e9   : > { %v1309_v38 = vsel %vm1278_vm9, %v1305_v31, %v1307_v56  ;;  %v1114_v56 = vadd.f32 %v1110_v4, %v927_v43  ;;  %v1316_v40 = vadd.f32 %v1312_v47, %v1113_v63 }
 0x1ea   : > { %v1313_v20 = vsel %vm3063_vm11, %v1309_v38, 0.0 }
 0x1ee   : > { %v3024_v16 = vpop.permute.xlu0 %1074 }
 0x1f0   : > { %v3026_v41 = vpop.permute.xlu1 %1076 }
 0x1f1   : > { %v1080_v26 = vsel %vm415_vm7, %v3024_v16, %v3026_v41 }
 0x1f2   : > { %v3028_v10 = vpop.permute.xlu0 %1078 }
 0x1f3   : > { %v1081_v51 = vsel %vm415_vm7, %v3026_v41, %v3028_v10 }
 0x1f4   : > { %v3030_v34 = vpop.permute.xlu1 %1272 }
 0x1f6   : > { %v3035_v12 = vpop.permute.xlu0 %1274 }
 0x1f7   : > { %v1279_v62 = vsel %vm1278_vm9, %v3030_v34, %v3035_v12 }
 0x1f8   : > { %v3039_v42 = vpop.permute.xlu1 %1276  ;;  %v1283_v16 = vsel %vm3059_vm10, %v1279_v62, 0.0 }
 0x1f9   : > { %v1280_v8 = vsel %vm1278_vm9, %v3035_v12, %v3039_v42  ;;  %v1084_v12 = vadd.f32 %v1080_v26, %v924_v52 }
 0x1fa   : > { %v1284_v41 = vsel %vm3063_vm11, %v1280_v8, 0.0 }
 0x1fb   : > { %v1314_v30 = vadd.f32 %v1283_v16, %v1084_v12 }
 0x210   : > { %v1506_v25 = vpop.permute.xlu0 %1505 }
 0x212   : > { %v1508_v29 = vpop.permute.xlu1 %1507 }
 0x213   : > { %v1511_v53 = vsel %vm1481_vm1, %v1506_v25, %v1508_v29  ;;  %v1317_v25 = vadd.f32 %v1313_v20, %v1114_v56 }
 0x214   : > { %v1510_v58 = vpop.permute.xlu0 %1509  ;;  %v1515_v17 = vsel %vm3080_vm12, %v1511_v53, 0.0 }
 0x215   : > { %v1512_v5 = vsel %vm1481_vm1, %v1508_v29, %v1510_v58  ;;  %v1519_v42 = vadd.f32 %v1515_v17, %v1316_v40  ;;  %v1085_v58 = vadd.f32 %v1081_v51, %v925_v6 }
 0x216   : > { %v1476_v0 = vpop.permute.xlu1 %1475  ;;  %v1516_v18 = vsel %vm3095_vm13, %v1512_v5, 0.0 }
 0x217   : > { %v1520_v2 = vadd.f32 %v1516_v18, %v1317_v25  ;;  %v1315_v60 = vadd.f32 %v1284_v41, %v1085_v58 }
 0x218   : > { %v1478_v37 = vpop.permute.xlu0 %1477 }
 0x219   : > { %v1482_v34 = vsel %vm1481_vm1, %v1476_v0, %v1478_v37 }
 0x21a   : > { %v1480_v7 = vpop.permute.xlu1 %1479  ;;  %v1486_v10 = vsel %vm3080_vm12, %v1482_v34, 0.0 }
 0x21b   : > { %v1483_v22 = vsel %vm1481_vm1, %v1478_v37, %v1480_v7  ;;  %v1517_v14 = vadd.f32 %v1486_v10, %v1314_v30 }
 0x21c   : > { %v1709_v55 = vpop.permute.xlu0 %1708  ;;  %v1487_v13 = vsel %vm3095_vm13, %v1483_v22, 0.0 }
 0x21d   : > { %v1518_v21 = vadd.f32 %v1487_v13, %v1315_v60 }
 0x21e   : > { %v1711_v9 = vpop.permute.xlu1 %1710 }
 0x21f   : > { %v1714_v23 = vsel %vm1684_vm14, %v1709_v55, %v1711_v9  ;;  %v1747_v55 = vld [vmem:[%s2361_s30] sm:$0xff]  ;;  %s2110_s30 = scalar_lea.vmem %s2109_s21, 256 }
 0x220   : > { %v1718_v29 = vsel %vm3109_vm15, %v1714_v23, 0.0  ;;  %v1713_v33 = vpop.permute.xlu0 %1712  ;;  %p2112_p3 = scmp.lt.s32.totalorder %s2110_s30, %s2104_s12 }
 0x221   : > { %v1715_v3 = vsel %vm1684_vm14, %v1711_v9, %v1713_v33  ;;  %v1722_v32 = vadd.f32 %v1718_v29, %v1519_v42 }
 0x222   : > { %v1719_v28 = vsel %vm3113_vm0, %v1715_v3, 0.0  ;;  %v1679_v11 = vpop.permute.xlu1 %1678  ;;  %p2113_p12 = por %p2112_p3, %p2111_p0 }
 0x223   : > { %v1723_v46 = vadd.f32 %v1719_v28, %v1520_v2  ;;  %v1726_v35 = vrot.slane %v1722_v32, 1 }
 0x224   : > { %v1681_v44 = vpop.permute.xlu0 %1680  ;;  %p2114_p5 = pnand %p2113_p12, %p2107_p7 }
 0x225   : > { %v1685_v0 = vsel %vm1684_vm14, %v1679_v11, %v1681_v44  ;;  %v1727_v61 = vrot.slane %v1723_v46, 1 }
 0x226   : > { %v1689_v45 = vsel %vm3109_vm15, %v1685_v0, 0.0  ;;  %v1683_v59 = vpop.permute.xlu1 %1682 }
 0x227   : > { %v1720_v24 = vadd.f32 %v1689_v45, %v1517_v14  ;;  %v1686_v48 = vsel %vm1684_vm14, %v1681_v44, %v1683_v59 }
 0x228   : > { %v1690_v27 = vsel %vm3113_vm0, %v1686_v48, 0.0 }
 0x229   : > { %v1730_v37 = vadd.f32 %v1726_v35, %v1720_v24  ;;  %v1721_v19 = vadd.f32 %v1690_v27, %v1518_v21 }
 0x22b   : > { %v1733_v57 = vadd.f32 %v1732_v49, %v1730_v37  ;;  %v1731_v38 = vadd.f32 %v1727_v61, %v1721_v19 }
 0x22d   : > { %v1967_v50 = vmul.f32 -1.442695, %v1733_v57  ;;  %v1734_v15 = vadd.f32 %v1732_v49, %v1731_v38 }
 0x22f   : > { %2050 = vpow2.f32 %v1967_v50  ;;  %v1968_v1 = vmul.f32 -1.442695, %v1734_v15 }
 0x231   : > { %2052 = vpow2.f32 %v1968_v1 }
 0x239   : > { %v2051_v4 = vpop.eup %2050 }
 0x23a   : > { %v1741_v7 = vadd.f32 1.0, %v2051_v4 }
 0x23b   : > { %v2053_v43 = vpop.eup %2052 }
 0x23c   : > { %2054 = vrcp.f32 %v1741_v7  ;;  %v1742_v39 = vadd.f32 1.0, %v2053_v43 }
 0x23e   : > { %2056 = vrcp.f32 %v1742_v39 }
 0x246   : > { %v2055_v47 = vpop.eup %2054 }
 0x247   : > { %v1751_v63 = vrot.slane %v2055_v47, %v2923_v36 }
 0x248   : > { %v2057_v53 = vpop.eup %2056 }
 0x249   : > { %v1755_v20 = vrot.slane %v2057_v53, %v2923_v36 }
 0x24b   : > { %v1758_v31 = vcombine.low %v1751_v63, %v1755_v20 }
 0x24d   : > { %v1760_v54 = vmul.f32 %v1758_v31, %v1747_v55 }
 0x24f   : > { %1761 = vst [vmem:[%s228_s24] sm:$0xff] %v1760_v54 }
 0x250   : > { %2117 = shalt.err (!%p2114_p5)
}
 0x251   : > { %s2118_s15 = scalar_lea.hbm %s3170_s5, 128  ;;  %s2122_s7 = scalar_lea.hbm %s3218_s4, 256 }
 0x252   : > { %p2119_p10 = scmp.ne.s32.totalorder %s3170_s5, %s2118_s15  ;;  %p2123_p4 = scmp.lt.u32.totalorder %s3170_s5, %s3218_s4 }
 0x253   : > { %p2124_p6 = scmp.lt.u32.totalorder %s2122_s7, %s2118_s15  ;;  %p2126_p9 = scmp.lt.u32.totalorder %s2118_s15, %s3170_s5 }
 0x254   : > { %p2120_p2 = pnand %p2119_p10, %p3257_p11 }
 0x255   : > { %p2125_p8 = por %p2124_p6, %p2123_p4 }
 0x256   : > { %p2121_p1 = pneg %p2120_p2 }
 0x257   : > { %p2127_p13 = por %p2126_p9, %p2125_p8 }
 0x259   : > { %p2128_p7 = pnand %p2127_p13, %p2121_p1 }
 0x25b   : > { %2131 = shalt.err (!%p2128_p7)
}
 0x25c   : > { %1982 = dma.vmem_to_hbm [thread:$0]  (%p3257_p11), %s3172_s29, 128, %s3170_s5, %s1763_s6  }
 0x25d PF: > { %s1789_s22 = sand.u32 1, %s2162_s17   ;;  %p3258_p0 = scmp.ne.s32.totalorder %s3223_s23, 0 }
 0x25e   : > { %p3259_p3 = scmp.ge.s32.totalorder %s2174_s20, 2  ;;  %s1790_s16 = scalar_lea.sflag [#allocation6], %s1789_s22 }
 0x260   : > { %p1993_p12 = pnand %p3259_p3, %p3258_p0 }
 0x262   : > { %2157 = dma.done.wait (!%p1993_p12), %s1790_s16, 128  }
 0x263   : > { %2159 = vsyncadd (!%p1993_p12), %s1790_s16, 4294967168  ;;  %p19_p5 = scmp.ge.s32.totalorder %s2274_s28, 4   ;;  %s3260_s17 = smov %s2166_s18 }
 0x264   : > { %s3261_s18 = smov %s2170_s19  ;;  %s3262_s19 = smov %s2298_s9 }
 0x265   : > { %s3263_s20 = smov %s2274_s28  ;;  %21 = sbr.rel (!%p19_p5) target bundleno = 8 (0x8), region = 88 }
 0x26c   :  { %1795 = vsyncpa [#allocation5], 1 }
 0x26d   :  { %1797 = vsyncpa [#allocation5 + $0x1], 1 }
 0x26e   :  { %1798 = vsyncpa [#allocation6], 1 }
 0x26f   :  { %1800 = vsyncpa [#allocation6 + $0x1], 1 }
 0x270   :  { %1801 = vsyncpa [#allocation7], 1 }
 0x271   :  { %1803 = vsyncpa [#allocation7 + $0x1], 1 }

</bundles_post_ra>
